<compile_context>
chip_gen: v5e
topology: v5e:2x2
jax: 0.10.0
libtpu: 0.0.40
codegen_flags: <defaults>
</compile_context>

<pallas_src>
import jax
import jax.numpy as jnp
from jax.experimental import pallas as pl
from jax.experimental.pallas import tpu as pltpu

NUM_FEATURES = 2048   # resnet50 num_features
HIDDEN = 64           # fc1 output
N_PROBS = 2           # animal_probs width

_LANES = 128
_MAX_THW = 16384                # caps the per-step lane-group unroll at 128 adds
_TARGET_BLOCK_BYTES = 4 << 20   # ~4 MiB image chunk per grid step
_MAX_IMG_2BUF_BYTES = 16 << 20  # double-buffered image budget (safe on v7x 64 MiB)


# ----------------------------------------------------------------------------
# Fused kernel: spatial-sum reduction over HW chunks + projection + head
# ----------------------------------------------------------------------------
def _fused_kernel(img_ref, probs_ref, wp_ref, bp_ref, w1_ref, b1_ref,
                  w2a_ref, w2b_ref, b2_ref, out_ref, pool_acc):
    # Grid: (batch tiles [parallel], HW chunks [arbitrary / reduction]).
    # img_ref : (tb*C, thw) f32  -- lane-dense chunk of the flattened image
    # probs_ref: (B, 2)     f32  -- resident; sliced per batch tile
    # wp_ref  : (C, F)      f32  (mean scale 1/HW folded in)
    # bp_ref  : (1, F)      f32
    # w1_ref  : (F, 64)     f32
    # b1_ref  : (1, 64)     f32
    # w2a_ref : (1, 64)     f32  (fc2 weights for the h part, transposed)
    # w2b_ref : (1, 2)      f32  (fc2 weights for the probs part, transposed)
    # b2_ref  : (1, 1)      f32
    # out_ref : (tb, 1)     f32
    # pool_acc: (tb*C, 128) f32 scratch -- running 128-lane partial spatial sums
    i = pl.program_id(0)
    j = pl.program_id(1)
    tb = out_ref.shape[0]
    n_ch = wp_ref.shape[0]
    thw = img_ref.shape[1]

    @pl.when(j == 0)
    def _():
        pool_acc[...] = jnp.zeros_like(pool_acc)

    # ---- hot loop: pure VPU lane-partial accumulation (no XLU reduce) -------
    if thw % _LANES == 0:
        s = img_ref[:, 0:_LANES].astype(jnp.float32)
        for g in range(1, thw // _LANES):
            s = s + img_ref[:, g * _LANES:(g + 1) * _LANES].astype(jnp.float32)
        pool_acc[...] += s
    else:
        # Rare fallback (HW not a multiple of 128): reduce the whole chunk and
        # accumulate into lane 0; the finalize sums all lanes either way.
        pool_acc[:, 0:1] += jnp.sum(img_ref[...].astype(jnp.float32),
                                    axis=-1, keepdims=True)

    # ---- finalize: once per batch tile --------------------------------------
    @pl.when(j == pl.num_programs(1) - 1)
    def _():
        # Regroup the (tb*C, 128) accumulator into a (tb, C) pooled-sum matrix:
        # channel c lives on the stride-C sublane slice starting at row c.
        lane_c = jax.lax.broadcasted_iota(jnp.int32, (1, n_ch), 1)
        pooled = jnp.zeros((tb, n_ch), jnp.float32)
        for c in range(n_ch):
            col = jnp.sum(pool_acc[pl.ds(c, tb, stride=n_ch), :],
                          axis=-1, keepdims=True)                # (tb, 1)
            pooled = pooled + jnp.where(lane_c == c, col, 0.0)   # place in lane c

        # Backbone stand-in projection on the MXU (1/HW already folded into wp).
        feat = jnp.dot(pooled, wp_ref[...],
                       preferred_element_type=jnp.float32) + bp_ref[...]

        # dropout (eval) == identity; fc1 + ReLU on the MXU (f32 accumulation).
        h = jnp.dot(feat, w1_ref[...],
                    preferred_element_type=jnp.float32) + b1_ref[...]
        h = jnp.maximum(h, 0.0)                                  # (tb, 64)

        # fc2 with N=1: VPU multiply + lane reduce (exactly cat([h,probs]) @ W2).
        probs = probs_ref[pl.ds(i * tb, tb), :]                  # (tb, 2)
        x = (jnp.sum(h * w2a_ref[...], axis=-1, keepdims=True)
             + jnp.sum(probs * w2b_ref[...], axis=-1, keepdims=True)
             + b2_ref[...])                                      # (tb, 1)

        out_ref[...] = jax.nn.sigmoid(x) * 100.0                 # loss == 'MSE'


# ----------------------------------------------------------------------------
# Tile-size selection
# ----------------------------------------------------------------------------
def _pick_tiles(B, C, HW, elem_bytes):
    """(batch tile, spatial tile) for the (B*C, HW) flattened image."""
    # Batch tile: divisor of B keeping every block legal
    # (the (tb, 1) output block needs tb % 8 == 0 unless tb == B).
    cands = [t for t in range(1, B + 1)
             if B % t == 0 and (t % 8 == 0 or t == B)]

    def _best(pool):
        under = [t for t in pool if t * C <= 512]        # cap sublane rows
        return max(under) if under else min(pool)

    multi = [t for t in cands if B // t >= 2]            # >=2 parallel tiles (v7x megacore)
    tb = _best(multi) if multi else _best(cands)
    # TODO(synk): when B // tb == 1 on v7x, additionally split HW over a second
    # "parallel" axis (per-split partial sums combined afterwards) so both
    # TensorCores stay busy.

    # Spatial tile: largest multiple-of-128 divisor of HW near the VMEM target.
    if HW % _LANES != 0:
        thw = HW                                         # full extent is always legal
    else:
        target = _TARGET_BLOCK_BYTES // max(1, tb * C * elem_bytes)
        target = max(_LANES, min(_MAX_THW, (target // _LANES) * _LANES))
        if HW <= target:
            thw = HW
        else:
            thw = _LANES
            d = 2 * _LANES
            while d <= target:
                if HW % d == 0:
                    thw = d
                d += _LANES

    # Keep the double-buffered image block within a safe VMEM budget.
    while 2 * tb * C * thw * elem_bytes > _MAX_IMG_2BUF_BYTES:
        smaller = [t for t in cands if t < tb]
        if not smaller:
            break
        tb = max(smaller)
    return tb, thw


# ----------------------------------------------------------------------------
# Full forward
# ----------------------------------------------------------------------------
def baseline6_forward(img, animal_probs, params):
    B, C, H, W = img.shape
    HW = H * W
    F = params["wp"].shape[1]

    # Free row-major reshape — no copy, no dtype cast; the kernel reads the
    # image from HBM in its native dtype and accumulates in f32.
    img2d = img.reshape(B * C, HW)
    probs = animal_probs.astype(jnp.float32)

    wp = params["wp"].astype(jnp.float32) / float(HW)    # fold mean scale into wp
    bp = params["bp"].astype(jnp.float32)
    w1 = params["w1"].astype(jnp.float32)
    b1 = params["b1"].astype(jnp.float32)
    w2a = params["w2a"].reshape(1, HIDDEN).astype(jnp.float32)
    w2b = params["w2b"].reshape(1, N_PROBS).astype(jnp.float32)
    b2 = params["b2"].astype(jnp.float32)

    elem = jnp.dtype(img2d.dtype).itemsize
    tb, thw = _pick_tiles(B, C, HW, elem)
    rows = tb * C
    grid = (B // tb, HW // thw)

    return pl.pallas_call(
        _fused_kernel,
        out_shape=jax.ShapeDtypeStruct((B, 1), jnp.float32),
        grid=grid,
        in_specs=[
            pl.BlockSpec((rows, thw), lambda i, j: (i, j)),      # image chunk (f32)
            pl.BlockSpec((B, N_PROBS), lambda i, j: (0, 0)),     # animal_probs (resident)
            pl.BlockSpec((C, F), lambda i, j: (0, 0)),           # wp (mean folded in)
            pl.BlockSpec((1, F), lambda i, j: (0, 0)),           # bp
            pl.BlockSpec((F, HIDDEN), lambda i, j: (0, 0)),      # w1
            pl.BlockSpec((1, HIDDEN), lambda i, j: (0, 0)),      # b1
            pl.BlockSpec((1, HIDDEN), lambda i, j: (0, 0)),      # w2a^T
            pl.BlockSpec((1, N_PROBS), lambda i, j: (0, 0)),     # w2b^T
            pl.BlockSpec((1, 1), lambda i, j: (0, 0)),           # b2
        ],
        out_specs=pl.BlockSpec((tb, 1), lambda i, j: (i, 0)),
        scratch_shapes=[pltpu.VMEM((rows, _LANES), jnp.float32)],
        compiler_params=pltpu.CompilerParams(
            dimension_semantics=("parallel", "arbitrary"),
            vmem_limit_bytes=32 * 1024 * 1024),
    )(img2d, probs, wp, bp, w1, b1, w2a, w2b, b2)


def init_params(key, in_channels):
    ks = jax.random.split(key, 6)
    scale_p = 1.0 / jnp.sqrt(in_channels)
    scale_1 = 1.0 / jnp.sqrt(NUM_FEATURES)
    scale_2 = 1.0 / jnp.sqrt(HIDDEN + N_PROBS)
    wp = jax.random.normal(ks[0], (in_channels, NUM_FEATURES), jnp.float32) * scale_p
    bp = jnp.zeros((1, NUM_FEATURES), jnp.float32)
    w1 = jax.random.uniform(ks[1], (NUM_FEATURES, HIDDEN), jnp.float32,
                            -scale_1, scale_1)
    b1 = jax.random.uniform(ks[2], (1, HIDDEN), jnp.float32, -scale_1, scale_1)
    w2 = jax.random.uniform(ks[3], (HIDDEN + N_PROBS, 1), jnp.float32,
                            -scale_2, scale_2)
    b2 = jax.random.uniform(ks[4], (1, 1), jnp.float32, -scale_2, scale_2)
    return {
        "wp": wp, "bp": bp,
        "w1": w1, "b1": b1,
        "w2a": w2[:HIDDEN, :], "w2b": w2[HIDDEN:, :], "b2": b2,
    }


if __name__ == "__main__":
    key = jax.random.PRNGKey(0)
    k_img, k_probs, k_params = jax.random.split(key, 3)

    B, C, H, W = 2, 4, 16, 16
    img = jax.random.normal(k_img, (B, C, H, W), jnp.float32)
    animal_probs = jax.nn.softmax(
        jax.random.normal(k_probs, (B, N_PROBS), jnp.float32), axis=-1)

    params = init_params(k_params, C)

    out = baseline6_forward(img, animal_probs, params)
    out = jax.block_until_ready(out)

    # Pure-JAX reference of the same (stand-in backbone + exact head) math.
    pooled_ref = img.reshape(B, C, H * W).mean(-1)
    feat_ref = pooled_ref @ params["wp"] + params["bp"]
    h_ref = jnp.maximum(feat_ref @ params["w1"] + params["b1"], 0.0)
    ref = jax.nn.sigmoid(
        jnp.concatenate([h_ref, animal_probs], axis=1)
        @ jnp.concatenate([params["w2a"], params["w2b"]], axis=0)
        + params["b2"]) * 100.0

    assert out.shape == (B, 1), out.shape
    assert bool(jnp.all(out > 0.0)) and bool(jnp.all(out < 100.0))
    assert bool(jnp.allclose(out, ref, atol=1e-1)), (out, ref)
    print("KERNEL_OK")
</pallas_src>

<mosaic_0001>
module attributes {stable_mosaic.version = 11 : i64} {
  func.func @_fused_kernel(%arg0: i32, %arg1: i32, %arg2: memref<8x256xf32, #tpu.memory_space<vmem>>, %arg3: memref<2x2xf32, #tpu.memory_space<vmem>>, %arg4: memref<4x2048xf32, #tpu.memory_space<vmem>>, %arg5: memref<1x2048xf32, #tpu.memory_space<vmem>>, %arg6: memref<2048x64xf32, #tpu.memory_space<vmem>>, %arg7: memref<1x64xf32, #tpu.memory_space<vmem>>, %arg8: memref<1x64xf32, #tpu.memory_space<vmem>>, %arg9: memref<1x2xf32, #tpu.memory_space<vmem>>, %arg10: memref<1x1xf32, #tpu.memory_space<vmem>>, %arg11: memref<2x1xf32, #tpu.memory_space<vmem>>, %arg12: memref<8x128xf32, #tpu.memory_space<vmem>>) attributes {dimension_semantics = [#tpu.dimension_semantics<parallel>, #tpu.dimension_semantics<arbitrary>], iteration_bounds = array<i64: 1, 1>, scalar_prefetch = 0 : i64, scratch_operands = 1 : i64, tpu.core_type = #tpu.core_type<tc>, window_params = [{transform_indices = @transform_0, window_bounds = array<i64: 8, 256>}, {pipeline_mode = #tpu.pipeline_mode<synchronous>, transform_indices = @transform_1, window_bounds = array<i64: 2, 2>}, {pipeline_mode = #tpu.pipeline_mode<synchronous>, transform_indices = @transform_2, window_bounds = array<i64: 4, 2048>}, {pipeline_mode = #tpu.pipeline_mode<synchronous>, transform_indices = @transform_3, window_bounds = array<i64: 1, 2048>}, {pipeline_mode = #tpu.pipeline_mode<synchronous>, transform_indices = @transform_4, window_bounds = array<i64: 2048, 64>}, {pipeline_mode = #tpu.pipeline_mode<synchronous>, transform_indices = @transform_5, window_bounds = array<i64: 1, 64>}, {pipeline_mode = #tpu.pipeline_mode<synchronous>, transform_indices = @transform_6, window_bounds = array<i64: 1, 64>}, {pipeline_mode = #tpu.pipeline_mode<synchronous>, transform_indices = @transform_7, window_bounds = array<i64: 1, 2>}, {pipeline_mode = #tpu.pipeline_mode<synchronous>, transform_indices = @transform_8, window_bounds = array<i64: 1, 1>}, {transform_indices = @transform_9, window_bounds = array<i64: 2, 1>}]} {
    %c0_i32 = arith.constant 0 : i32
    %0 = arith.cmpi eq, %arg1, %c0_i32 : i32
    %1 = arith.extui %0 : i1 to i32
    %c0_i32_0 = arith.constant 0 : i32
    %2 = arith.cmpi ne, %1, %c0_i32_0 : i32
    scf.if %2 {
      %cst = arith.constant 0.000000e+00 : f32
      %12 = vector.broadcast %cst : f32 to vector<8x128xf32>
      %c0_9 = arith.constant 0 : index
      %c0_10 = arith.constant 0 : index
      %13 = vector.load %arg12[%c0_9, %c0_10] : memref<8x128xf32, #tpu.memory_space<vmem>>, vector<8x128xf32>
      tpu.vector_store %arg12[%c0_9, %c0_10], %12 {strides = array<i32>} : memref<8x128xf32, #tpu.memory_space<vmem>>, vector<8x128xf32>,
    } else {
    }
    %c0 = arith.constant 0 : index
    %c0_1 = arith.constant 0 : index
    %3 = vector.load %arg2[%c0, %c0_1] : memref<8x256xf32, #tpu.memory_space<vmem>>, vector<8x128xf32>
    %c0_2 = arith.constant 0 : index
    %c128 = arith.constant 128 : index
    %4 = vector.load %arg2[%c0_2, %c128] : memref<8x256xf32, #tpu.memory_space<vmem>>, vector<8x128xf32>
    %5 = arith.addf %3, %4 : vector<8x128xf32>
    %c0_3 = arith.constant 0 : index
    %c0_4 = arith.constant 0 : index
    %6 = vector.load %arg12[%c0_3, %c0_4] : memref<8x128xf32, #tpu.memory_space<vmem>>, vector<8x128xf32>
    %7 = arith.addf %6, %5 : vector<8x128xf32>
    %c0_5 = arith.constant 0 : index
    %c0_6 = arith.constant 0 : index
    %8 = vector.load %arg12[%c0_5, %c0_6] : memref<8x128xf32, #tpu.memory_space<vmem>>, vector<8x128xf32>
    tpu.vector_store %arg12[%c0_5, %c0_6], %7 {strides = array<i32>} : memref<8x128xf32, #tpu.memory_space<vmem>>, vector<8x128xf32>,
    %c0_i32_7 = arith.constant 0 : i32
    %9 = arith.cmpi eq, %arg1, %c0_i32_7 : i32
    %10 = arith.extui %9 : i1 to i32
    %c0_i32_8 = arith.constant 0 : i32
    %11 = arith.cmpi ne, %10, %c0_i32_8 : i32
    scf.if %11 {
      %12 = tpu.iota {dimensions = array<i32: 1>} : vector<1x4xi32>
      %cst = arith.constant 0.000000e+00 : f32
      %13 = vector.broadcast %cst : f32 to vector<2x4xf32>
      %c0_9 = arith.constant 0 : index
      %c0_10 = arith.constant 0 : index
      %14 = tpu.strided_load %arg12[%c0_9, %c0_10] {strides = array<i32: 4, 1>} : memref<8x128xf32, #tpu.memory_space<vmem>>, vector<2x128xf32>
      %cst_11 = arith.constant dense<0.000000e+00> : vector<2xf32>
      %15 = vector.multi_reduction <add>, %14, %cst_11 [1] : vector<2x128xf32> to vector<2xf32>
      %16 = vector.shape_cast %15 : vector<2xf32> to vector<2x1xf32>
      %c0_i32_12 = arith.constant 0 : i32
      %17 = vector.broadcast %c0_i32_12 : i32 to vector<1x4xi32>
      %18 = arith.cmpi eq, %12, %17 : vector<1x4xi32>
      %cst_13 = arith.constant 0.000000e+00 : f32
      %19 = vector.shape_cast %18 : vector<1x4xi1> to vector<1x4xi1>
      %20 = vector.broadcast %19 : vector<1x4xi1> to vector<2x4xi1>
      %21 = vector.shape_cast %16 : vector<2x1xf32> to vector<2x1xf32>
      %22 = vector.broadcast %21 : vector<2x1xf32> to vector<2x4xf32>
      %23 = vector.broadcast %cst_13 : f32 to vector<2x4xf32>
      %24 = arith.select %20, %22, %23 : vector<2x4xi1>, vector<2x4xf32>
      %25 = arith.addf %13, %24 : vector<2x4xf32>
      %c1 = arith.constant 1 : index
      %c0_14 = arith.constant 0 : index
      %26 = tpu.strided_load %arg12[%c1, %c0_14] {strides = array<i32: 4, 1>} : memref<8x128xf32, #tpu.memory_space<vmem>>, vector<2x128xf32>
      %cst_15 = arith.constant dense<0.000000e+00> : vector<2xf32>
      %27 = vector.multi_reduction <add>, %26, %cst_15 [1] : vector<2x128xf32> to vector<2xf32>
      %28 = vector.shape_cast %27 : vector<2xf32> to vector<2x1xf32>
      %c1_i32 = arith.constant 1 : i32
      %29 = vector.broadcast %c1_i32 : i32 to vector<1x4xi32>
      %30 = arith.cmpi eq, %12, %29 : vector<1x4xi32>
      %cst_16 = arith.constant 0.000000e+00 : f32
      %31 = vector.shape_cast %30 : vector<1x4xi1> to vector<1x4xi1>
      %32 = vector.broadcast %31 : vector<1x4xi1> to vector<2x4xi1>
      %33 = vector.shape_cast %28 : vector<2x1xf32> to vector<2x1xf32>
      %34 = vector.broadcast %33 : vector<2x1xf32> to vector<2x4xf32>
      %35 = vector.broadcast %cst_16 : f32 to vector<2x4xf32>
      %36 = arith.select %32, %34, %35 : vector<2x4xi1>, vector<2x4xf32>
      %37 = arith.addf %25, %36 : vector<2x4xf32>
      %c2 = arith.constant 2 : index
      %c0_17 = arith.constant 0 : index
      %38 = tpu.strided_load %arg12[%c2, %c0_17] {strides = array<i32: 4, 1>} : memref<8x128xf32, #tpu.memory_space<vmem>>, vector<2x128xf32>
      %cst_18 = arith.constant dense<0.000000e+00> : vector<2xf32>
      %39 = vector.multi_reduction <add>, %38, %cst_18 [1] : vector<2x128xf32> to vector<2xf32>
      %40 = vector.shape_cast %39 : vector<2xf32> to vector<2x1xf32>
      %c2_i32 = arith.constant 2 : i32
      %41 = vector.broadcast %c2_i32 : i32 to vector<1x4xi32>
      %42 = arith.cmpi eq, %12, %41 : vector<1x4xi32>
      %cst_19 = arith.constant 0.000000e+00 : f32
      %43 = vector.shape_cast %42 : vector<1x4xi1> to vector<1x4xi1>
      %44 = vector.broadcast %43 : vector<1x4xi1> to vector<2x4xi1>
      %45 = vector.shape_cast %40 : vector<2x1xf32> to vector<2x1xf32>
      %46 = vector.broadcast %45 : vector<2x1xf32> to vector<2x4xf32>
      %47 = vector.broadcast %cst_19 : f32 to vector<2x4xf32>
      %48 = arith.select %44, %46, %47 : vector<2x4xi1>, vector<2x4xf32>
      %49 = arith.addf %37, %48 : vector<2x4xf32>
      %c3 = arith.constant 3 : index
      %c0_20 = arith.constant 0 : index
      %50 = tpu.strided_load %arg12[%c3, %c0_20] {strides = array<i32: 4, 1>} : memref<8x128xf32, #tpu.memory_space<vmem>>, vector<2x128xf32>
      %cst_21 = arith.constant dense<0.000000e+00> : vector<2xf32>
      %51 = vector.multi_reduction <add>, %50, %cst_21 [1] : vector<2x128xf32> to vector<2xf32>
      %52 = vector.shape_cast %51 : vector<2xf32> to vector<2x1xf32>
      %c3_i32 = arith.constant 3 : i32
      %53 = vector.broadcast %c3_i32 : i32 to vector<1x4xi32>
      %54 = arith.cmpi eq, %12, %53 : vector<1x4xi32>
      %cst_22 = arith.constant 0.000000e+00 : f32
      %55 = vector.shape_cast %54 : vector<1x4xi1> to vector<1x4xi1>
      %56 = vector.broadcast %55 : vector<1x4xi1> to vector<2x4xi1>
      %57 = vector.shape_cast %52 : vector<2x1xf32> to vector<2x1xf32>
      %58 = vector.broadcast %57 : vector<2x1xf32> to vector<2x4xf32>
      %59 = vector.broadcast %cst_22 : f32 to vector<2x4xf32>
      %60 = arith.select %56, %58, %59 : vector<2x4xi1>, vector<2x4xf32>
      %61 = arith.addf %49, %60 : vector<2x4xf32>
      %c0_23 = arith.constant 0 : index
      %c0_24 = arith.constant 0 : index
      %62 = vector.load %arg4[%c0_23, %c0_24] : memref<4x2048xf32, #tpu.memory_space<vmem>>, vector<4x2048xf32>
      %cst_25 = arith.constant dense<0.000000e+00> : vector<2x2048xf32>
      %63 = tpu.matmul %61, %62, %cst_25 {dimension_numbers = #tpu.dot_dimension_numbers<[1], [0], [0], [1], [0, 0, 1, 1], [], []>} : vector<2x4xf32>, vector<4x2048xf32>, vector<2x2048xf32> -> vector<2x2048xf32>
      %c0_26 = arith.constant 0 : index
      %c0_27 = arith.constant 0 : index
      %64 = vector.load %arg5[%c0_26, %c0_27] : memref<1x2048xf32, #tpu.memory_space<vmem>>, vector<1x2048xf32>
      %65 = vector.broadcast %64 : vector<1x2048xf32> to vector<2x2048xf32>
      %66 = arith.addf %63, %65 : vector<2x2048xf32>
      %c0_28 = arith.constant 0 : index
      %c0_29 = arith.constant 0 : index
      %67 = vector.load %arg6[%c0_28, %c0_29] : memref<2048x64xf32, #tpu.memory_space<vmem>>, vector<2048x64xf32>
      %cst_30 = arith.constant dense<0.000000e+00> : vector<2x64xf32>
      %68 = tpu.matmul %66, %67, %cst_30 {dimension_numbers = #tpu.dot_dimension_numbers<[1], [0], [0], [1], [0, 0, 1, 1], [], []>} : vector<2x2048xf32>, vector<2048x64xf32>, vector<2x64xf32> -> vector<2x64xf32>
      %c0_31 = arith.constant 0 : index
      %c0_32 = arith.constant 0 : index
      %69 = vector.load %arg7[%c0_31, %c0_32] : memref<1x64xf32, #tpu.memory_space<vmem>>, vector<1x64xf32>
      %70 = vector.broadcast %69 : vector<1x64xf32> to vector<2x64xf32>
      %71 = arith.addf %68, %70 : vector<2x64xf32>
      %cst_33 = arith.constant 0.000000e+00 : f32
      %72 = vector.broadcast %cst_33 : f32 to vector<2x64xf32>
      %73 = arith.maximumf %71, %72 : vector<2x64xf32>
      %c2_i32_34 = arith.constant 2 : i32
      %74 = arith.muli %arg0, %c2_i32_34 : i32
      %75 = arith.index_cast %74 : i32 to index
      %c0_35 = arith.constant 0 : index
      %76 = vector.load %arg3[%75, %c0_35] : memref<2x2xf32, #tpu.memory_space<vmem>>, vector<2x2xf32>
      %c0_36 = arith.constant 0 : index
      %c0_37 = arith.constant 0 : index
      %77 = vector.load %arg8[%c0_36, %c0_37] : memref<1x64xf32, #tpu.memory_space<vmem>>, vector<1x64xf32>
      %78 = vector.broadcast %77 : vector<1x64xf32> to vector<2x64xf32>
      %79 = arith.mulf %73, %78 : vector<2x64xf32>
      %cst_38 = arith.constant dense<0.000000e+00> : vector<2xf32>
      %80 = vector.multi_reduction <add>, %79, %cst_38 [1] : vector<2x64xf32> to vector<2xf32>
      %81 = vector.shape_cast %80 : vector<2xf32> to vector<2x1xf32>
      %c0_39 = arith.constant 0 : index
      %c0_40 = arith.constant 0 : index
      %82 = vector.load %arg9[%c0_39, %c0_40] : memref<1x2xf32, #tpu.memory_space<vmem>>, vector<1x2xf32>
      %83 = vector.broadcast %82 : vector<1x2xf32> to vector<2x2xf32>
      %84 = arith.mulf %76, %83 : vector<2x2xf32>
      %cst_41 = arith.constant dense<0.000000e+00> : vector<2xf32>
      %85 = vector.multi_reduction <add>, %84, %cst_41 [1] : vector<2x2xf32> to vector<2xf32>
      %86 = vector.shape_cast %85 : vector<2xf32> to vector<2x1xf32>
      %87 = arith.addf %81, %86 : vector<2x1xf32>
      %c0_42 = arith.constant 0 : index
      %c0_43 = arith.constant 0 : index
      %88 = vector.load %arg10[%c0_42, %c0_43] : memref<1x1xf32, #tpu.memory_space<vmem>>, vector<1x1xf32>
      %89 = vector.broadcast %88 : vector<1x1xf32> to vector<2x1xf32>
      %90 = arith.addf %87, %89 : vector<2x1xf32>
      %91 = arith.negf %90 : vector<2x1xf32>
      %92 = math.exp %91 : vector<2x1xf32>
      %cst_44 = arith.constant 1.000000e+00 : f32
      %93 = vector.broadcast %cst_44 : f32 to vector<2x1xf32>
      %94 = arith.addf %93, %92 : vector<2x1xf32>
      %95 = arith.divf %93, %94 : vector<2x1xf32>
      %cst_45 = arith.constant 1.000000e+02 : f32
      %96 = vector.broadcast %cst_45 : f32 to vector<2x1xf32>
      %97 = arith.mulf %95, %96 : vector<2x1xf32>
      %c0_46 = arith.constant 0 : index
      %c0_47 = arith.constant 0 : index
      %98 = vector.load %arg11[%c0_46, %c0_47] : memref<2x1xf32, #tpu.memory_space<vmem>>, vector<2x1xf32>
      tpu.vector_store %arg11[%c0_46, %c0_47], %97 {strides = array<i32>} : memref<2x1xf32, #tpu.memory_space<vmem>>, vector<2x1xf32>,
    } else {
    }
    return
  }
  func.func @transform_0(%arg0: i32, %arg1: i32) -> (i32, i32) {
    %c0_i32 = arith.constant 0 : i32
    return %arg0, %arg1 : i32, i32
  }
  func.func @transform_1(%arg0: i32, %arg1: i32) -> (i32, i32) {
    %c0_i32 = arith.constant 0 : i32
    %c0_i32_0 = arith.constant 0 : i32
    %c0_i32_1 = arith.constant 0 : i32
    return %c0_i32, %c0_i32_0 : i32, i32
  }
  func.func @transform_2(%arg0: i32, %arg1: i32) -> (i32, i32) {
    %c0_i32 = arith.constant 0 : i32
    %c0_i32_0 = arith.constant 0 : i32
    %c0_i32_1 = arith.constant 0 : i32
    return %c0_i32, %c0_i32_0 : i32, i32
  }
  func.func @transform_3(%arg0: i32, %arg1: i32) -> (i32, i32) {
    %c0_i32 = arith.constant 0 : i32
    %c0_i32_0 = arith.constant 0 : i32
    %c0_i32_1 = arith.constant 0 : i32
    return %c0_i32, %c0_i32_0 : i32, i32
  }
  func.func @transform_4(%arg0: i32, %arg1: i32) -> (i32, i32) {
    %c0_i32 = arith.constant 0 : i32
    %c0_i32_0 = arith.constant 0 : i32
    %c0_i32_1 = arith.constant 0 : i32
    return %c0_i32, %c0_i32_0 : i32, i32
  }
  func.func @transform_5(%arg0: i32, %arg1: i32) -> (i32, i32) {
    %c0_i32 = arith.constant 0 : i32
    %c0_i32_0 = arith.constant 0 : i32
    %c0_i32_1 = arith.constant 0 : i32
    return %c0_i32, %c0_i32_0 : i32, i32
  }
  func.func @transform_6(%arg0: i32, %arg1: i32) -> (i32, i32) {
    %c0_i32 = arith.constant 0 : i32
    %c0_i32_0 = arith.constant 0 : i32
    %c0_i32_1 = arith.constant 0 : i32
    return %c0_i32, %c0_i32_0 : i32, i32
  }
  func.func @transform_7(%arg0: i32, %arg1: i32) -> (i32, i32) {
    %c0_i32 = arith.constant 0 : i32
    %c0_i32_0 = arith.constant 0 : i32
    %c0_i32_1 = arith.constant 0 : i32
    return %c0_i32, %c0_i32_0 : i32, i32
  }
  func.func @transform_8(%arg0: i32, %arg1: i32) -> (i32, i32) {
    %c0_i32 = arith.constant 0 : i32
    %c0_i32_0 = arith.constant 0 : i32
    %c0_i32_1 = arith.constant 0 : i32
    return %c0_i32, %c0_i32_0 : i32, i32
  }
  func.func @transform_9(%arg0: i32, %arg1: i32) -> (i32, i32) {
    %c0_i32 = arith.constant 0 : i32
    %c0_i32_0 = arith.constant 0 : i32
    return %arg0, %c0_i32 : i32, i32
  }
}

</mosaic_0001>

<bundles_post_ra>
// kernel: tpu_custom_call.1
= control target key start
LH: loop header
LB: loop body
LE: loop exit
PB: predicated region body
PF: predicated region fallthrough
CT: control target
= control target key end

     0   :  { %vm51_vm0 = vcmask 1041408   ;;  %vm173_vm1 = vcmask 1043456   ;;  %v48_v27 = vlaneseq  ;;  %vm169_vm6 = vcmask 31744   ;;  %s2126_s0 = inlined_call_operand.vmem [shape: f32[8,256], index: 0, kind: input, shape index: {}]   ;;  %s2127_s2 = inlined_call_operand.vmem [shape: f32[4,2048], index: 2, kind: input, shape index: {}]   ;;  %s2128_s4 = inlined_call_operand.vmem [shape: f32[2048,64], index: 4, kind: input, shape index: {}]   ;;  %s2129_s5 = inlined_call_operand.vmem [shape: f32[1,64], index: 5, kind: input, shape index: {}]   ;;  %s2130_s3 = inlined_call_operand.vmem [shape: f32[1,2048], index: 3, kind: input, shape index: {}]   ;;  %s2131_s6 = inlined_call_operand.vmem [shape: f32[1,64], index: 6, kind: input, shape index: {}]   ;;  %s2132_s7 = inlined_call_operand.vmem [shape: f32[1,2], index: 7, kind: input, shape index: {}]   ;;  %s2133_s1 = inlined_call_operand.vmem [shape: f32[2,2], index: 1, kind: input, shape index: {}]   ;;  %s2134_s8 = inlined_call_operand.<no memory space> [shape: f32[1,1], index: 8, kind: input, shape index: {}]   ;;  %s2135_s9 = inlined_call_operand.vmem [shape: f32[2,1], index: 9, kind: output, shape index: {}]  }
   0x1   :  { %v39_v0 = vld [vmem:[%s2126_s0] sm:$0xff]  ;;  %v40_v1 = vld [vmem:[%s2126_s0 + $0x8] sm:$0xff]  ;;  %v92_v19 = vld [vmem:[%s2127_s2 + $0x10] sm:$0xff]  ;;  %vm1115_vm7 = vcmask 517120   ;;  %vm1124_vm8 = vcmask 9216   ;;  %vm1154_vm13 = vcmask 1024  }
   0x2   :  { %v41_v2 = vadd.f32 %v40_v1, %v39_v0  ;;  %v90_v11 = vld [vmem:[%s2127_s2] sm:$0xff]  ;;  %v91_v12 = vld [vmem:[%s2127_s2 + $0x8] sm:$0xff]  ;;  %v93_v20 = vld [vmem:[%s2127_s2 + $0x18] sm:$0xff]  ;;  %146 = vst [vmem:[#allocation1 + $0x20] ss:$2 sm:$0xff] %v92_v19  ;;  %v49_v30 = vand.u32 127, %v48_v27 }
   0x3   :  { %142 = vst [vmem:[#allocation1] ss:$2 sm:$0xff] %v90_v11  ;;  %v94_v14 = vld [vmem:[%s2127_s2 + $0x20] sm:$0xff]  ;;  %v95_v15 = vld [vmem:[%s2127_s2 + $0x28] sm:$0xff]  ;;  %v96_v21 = vld [vmem:[%s2127_s2 + $0x30] sm:$0xff] }
   0x4   :  { %44 = vst [vmem:[#allocation2] sm:$0xff] %v41_v2  ;;  %v97_v22 = vld [vmem:[%s2127_s2 + $0x38] sm:$0xff]  ;;  %vm55_vm2 = vcmp.eq.s32.totalorder %v49_v30, 0  ;;  %vm65_vm3 = vcmp.eq.s32.totalorder %v49_v30, 1  ;;  %vm75_vm4 = vcmp.eq.s32.totalorder %v49_v30, 2  ;;  %vm85_vm5 = vcmp.eq.s32.totalorder %v49_v30, 3 }
   0x5   :  { %144 = vst [vmem:[#allocation1 + $0x10] ss:$2 sm:$0xff] %v91_v12  ;;  %v541_v48 = vld [vmem:[%s2128_s4 + $0x78] sm:$0xff]  ;;  %v540_v52 = vld [vmem:[%s2128_s4 + $0x70] sm:$0xff]  ;;  %v539_v56 = vld [vmem:[%s2128_s4 + $0x68] sm:$0xff] }
   0x6   :  { %148 = vst [vmem:[#allocation1 + $0x30] ss:$2 sm:$0xff] %v93_v20  ;;  %v557_v49 = vld [vmem:[%s2128_s4 + $0xf8] sm:$0xff]  ;;  %v556_v53 = vld [vmem:[%s2128_s4 + $0xf0] sm:$0xff]  ;;  %v555_v57 = vld [vmem:[%s2128_s4 + $0xe8] sm:$0xff] }
   0x7   :  { %v573_v50 = vld [vmem:[%s2128_s4 + $0x178] sm:$0xff]  ;;  %v572_v54 = vld [vmem:[%s2128_s4 + $0x170] sm:$0xff]  ;;  %v571_v58 = vld [vmem:[%s2128_s4 + $0x168] sm:$0xff] }
   0x8   :  { %v589_v51 = vld [vmem:[%s2128_s4 + $0x1f8] sm:$0xff]  ;;  %v588_v55 = vld [vmem:[%s2128_s4 + $0x1f0] sm:$0xff]  ;;  %v587_v59 = vld [vmem:[%s2128_s4 + $0x1e8] sm:$0xff] }
   0x9   :  { %v153_v23 = vld.sshfl [vmem:[#allocation1 + $0x20] sm:$0xff pattern:$0x75316420]  ;;  %v154_v24 = vld.sshfl [vmem:[#allocation1 + $0x28] sm:$0xff pattern:$0x75316420] }
   0xa   :  { %v149_v13 = vld.sshfl [vmem:[#allocation1] sm:$0xff pattern:$0x75316420]  ;;  %v150_v16 = vld.sshfl [vmem:[#allocation1 + $0x8] sm:$0xff pattern:$0x75316420] }
   0xb   :  { %v50_v3 = vld [vmem:[#allocation2] ss:$4 sm:$0x3]  ;;  %v71_v4 = vld [vmem:[#allocation2 + $0x2] ss:$4 sm:$0x3]  ;;  %1160 = vmatpush.msk.msra.mxu0 %vm173_vm1, %v149_v13  ;;  %1162 = vmatpush.msk.msra.mxu1 %vm173_vm1, %v150_v16 }
   0xc   :  { %v52_v5 = vsel %vm51_vm0, %v50_v3, 0.0  ;;  %v72_v6 = vsel %vm51_vm0, %v71_v4, 0.0  ;;  %v61_v7 = vld [vmem:[#allocation2 + $0x1] ss:$4 sm:$0x3]  ;;  %v538_v60 = vld [vmem:[%s2128_s4 + $0x60] sm:$0xff] }
   0xd   :  { %53 = vadd.xlane.f32.xlu0 %v52_v5  ;;  %73 = vadd.xlane.f32.xlu1 %v72_v6  ;;  %v81_v8 = vld [vmem:[#allocation2 + $0x3] ss:$4 sm:$0x3]  ;;  %v62_v9 = vsel %vm51_vm0, %v61_v7, 0.0  ;;  %157 = vst [vmem:[#allocation1] ss:$2 sm:$0xff] %v94_v14 }
   0xe   :  { %v82_v10 = vsel %vm51_vm0, %v81_v8, 0.0  ;;  %v151_v17 = vld.sshfl [vmem:[#allocation1 + $0x10] sm:$0xff pattern:$0x75316420]  ;;  %1168 = vmatpush.msk.msrb.mxu0 %vm173_vm1, %v153_v23  ;;  %159 = vst [vmem:[#allocation1 + $0x20] ss:$2 sm:$0xff] %v96_v21  ;;  %1170 = vmatpush.msk.msrb.mxu1 %vm173_vm1, %v154_v24 }
   0xf   :  { %1164 = vmatpush.msk.msra.mxu2 %vm173_vm1, %v151_v17  ;;  %v152_v18 = vld.sshfl [vmem:[#allocation1 + $0x18] sm:$0xff pattern:$0x75316420]  ;;  %v155_v25 = vld.sshfl [vmem:[#allocation1 + $0x30] sm:$0xff pattern:$0x75316420] }
  0x10   :  { %158 = vst [vmem:[#allocation1 + $0x10] ss:$2 sm:$0xff] %v95_v15  ;;  %1166 = vmatpush.msk.msra.mxu3 %vm173_vm1, %v152_v18  ;;  %v156_v26 = vld.sshfl [vmem:[#allocation1 + $0x38] sm:$0xff pattern:$0x75316420]  ;;  %v554_v61 = vld [vmem:[%s2128_s4 + $0xe0] sm:$0xff] }
  0x11   :  { %1172 = vmatpush.msk.msrb.mxu2 %vm173_vm1, %v155_v25  ;;  %160 = vst [vmem:[#allocation1 + $0x30] ss:$2 sm:$0xff] %v97_v22  ;;  %v570_v62 = vld [vmem:[%s2128_s4 + $0x160] sm:$0xff]  ;;  %v537_v0 = vld [vmem:[%s2128_s4 + $0x58] sm:$0xff]  ;;  %v536_v4 = vld [vmem:[%s2128_s4 + $0x50] sm:$0xff] }
  0x12   :  { %1174 = vmatpush.msk.msrb.mxu3 %vm173_vm1, %v156_v26  ;;  %v586_v63 = vld [vmem:[%s2128_s4 + $0x1e0] sm:$0xff]  ;;  %v553_v1 = vld [vmem:[%s2128_s4 + $0xd8] sm:$0xff]  ;;  %v552_v5 = vld [vmem:[%s2128_s4 + $0xd0] sm:$0xff] }
  0x13   :  { %v569_v2 = vld [vmem:[%s2128_s4 + $0x158] sm:$0xff]  ;;  %v568_v6 = vld [vmem:[%s2128_s4 + $0x150] sm:$0xff]  ;;  %v535_v8 = vld [vmem:[%s2128_s4 + $0x48] sm:$0xff] }
  0x14   :  { %v161_v40 = vld.sshfl [vmem:[#allocation1] sm:$0xff pattern:$0x75316420]  ;;  %v162_v41 = vld.sshfl [vmem:[#allocation1 + $0x8] sm:$0xff pattern:$0x75316420] }
  0x15   :  { %63 = vadd.xlane.f32.xlu0 %v62_v9  ;;  %83 = vadd.xlane.f32.xlu1 %v82_v10  ;;  %v165_v44 = vld.sshfl [vmem:[#allocation1 + $0x20] sm:$0xff pattern:$0x75316420]  ;;  %v166_v45 = vld.sshfl [vmem:[#allocation1 + $0x28] sm:$0xff pattern:$0x75316420] }
  0x16   :  { %v585_v3 = vld [vmem:[%s2128_s4 + $0x1d8] sm:$0xff]  ;;  %v584_v7 = vld [vmem:[%s2128_s4 + $0x1d0] sm:$0xff]  ;;  %v551_v9 = vld [vmem:[%s2128_s4 + $0xc8] sm:$0xff] }
  0x17   :  { %v163_v42 = vld.sshfl [vmem:[#allocation1 + $0x10] sm:$0xff pattern:$0x75316420]  ;;  %v164_v43 = vld.sshfl [vmem:[#allocation1 + $0x18] sm:$0xff pattern:$0x75316420] }
  0x18   :  { %v167_v46 = vld.sshfl [vmem:[#allocation1 + $0x30] sm:$0xff pattern:$0x75316420]  ;;  %v168_v47 = vld.sshfl [vmem:[#allocation1 + $0x38] sm:$0xff pattern:$0x75316420] }
  0x19   :  { %v567_v10 = vld [vmem:[%s2128_s4 + $0x148] sm:$0xff]  ;;  %v534_v12 = vld [vmem:[%s2128_s4 + $0x40] sm:$0xff]  ;;  %v533_v16 = vld [vmem:[%s2128_s4 + $0x38] sm:$0xff] }
  0x1a   :  { %v583_v11 = vld [vmem:[%s2128_s4 + $0x1c8] sm:$0xff]  ;;  %v550_v13 = vld [vmem:[%s2128_s4 + $0xc0] sm:$0xff]  ;;  %v549_v17 = vld [vmem:[%s2128_s4 + $0xb8] sm:$0xff] }
  0x1b   :  { %v566_v14 = vld [vmem:[%s2128_s4 + $0x140] sm:$0xff]  ;;  %v565_v18 = vld [vmem:[%s2128_s4 + $0x138] sm:$0xff]  ;;  %v532_v20 = vld [vmem:[%s2128_s4 + $0x30] sm:$0xff] }
  0x1c   :  { %v582_v15 = vld [vmem:[%s2128_s4 + $0x1c0] sm:$0xff]  ;;  %v581_v19 = vld [vmem:[%s2128_s4 + $0x1b8] sm:$0xff]  ;;  %v548_v21 = vld [vmem:[%s2128_s4 + $0xb0] sm:$0xff] }
  0x1d   :  { %v564_v22 = vld [vmem:[%s2128_s4 + $0x130] sm:$0xff]  ;;  %v531_v24 = vld [vmem:[%s2128_s4 + $0x28] sm:$0xff]  ;;  %v562_v30 = vld [vmem:[%s2128_s4 + $0x120] sm:$0xff] }
  0x1e   :  { %v580_v23 = vld [vmem:[%s2128_s4 + $0x1b0] sm:$0xff]  ;;  %v547_v25 = vld [vmem:[%s2128_s4 + $0xa8] sm:$0xff] }
  0x1f   :  { %v563_v26 = vld [vmem:[%s2128_s4 + $0x128] sm:$0xff] }
  0x20   :  { %v579_v27 = vld [vmem:[%s2128_s4 + $0x1a8] sm:$0xff] }
  0x80   :  { %v54_v28 = vpop.xlane.xlu0 %53  ;;  %v74_v29 = vpop.xlane.xlu1 %73 }
  0x81   :  { %v58_v33 = vsel %vm55_vm2, %v54_v28, 0.0  ;;  %v78_v36 = vsel %vm75_vm4, %v74_v29, 0.0  ;;  %v530_v28 = vld [vmem:[%s2128_s4 + $0x20] sm:$0xff] }
  0x82   :  { %v546_v29 = vld [vmem:[%s2128_s4 + $0xa0] sm:$0xff] }
  0x88   :  { %v64_v31 = vpop.xlane.xlu0 %63  ;;  %v84_v32 = vpop.xlane.xlu1 %83 }
  0x89   :  { %v68_v34 = vsel %vm65_vm3, %v64_v31, 0.0  ;;  %v88_v37 = vsel %vm85_vm5, %v84_v32, 0.0  ;;  %v578_v31 = vld [vmem:[%s2128_s4 + $0x1a0] sm:$0xff]  ;;  %v529_v32 = vld [vmem:[%s2128_s4 + $0x18] sm:$0xff] }
  0x8a   :  { %v69_v35 = vadd.f32 %v68_v34, %v58_v33  ;;  %v545_v33 = vld [vmem:[%s2128_s4 + $0x98] sm:$0xff] }
  0x8b   :  { %v561_v34 = vld [vmem:[%s2128_s4 + $0x118] sm:$0xff] }
  0x8c   :  { %v79_v38 = vadd.f32 %v78_v36, %v69_v35  ;;  %v577_v35 = vld [vmem:[%s2128_s4 + $0x198] sm:$0xff]  ;;  %v528_v36 = vld [vmem:[%s2128_s4 + $0x10] sm:$0xff] }
  0x8e   :  { %v89_v39 = vadd.f32 %v88_v37, %v79_v38  ;;  %v544_v37 = vld [vmem:[%s2128_s4 + $0x90] sm:$0xff] }
  0x8f   :  { %v560_v38 = vld [vmem:[%s2128_s4 + $0x110] sm:$0xff] }
  0x90   :  { %1161 = vmatmul.msk.f32.vlgmr.msra.gmra.mxu0 %vm169_vm6, %v89_v39  ;;  %1163 = vmatmul.msk.f32.vlgmr.msra.gmra.mxu1 %vm169_vm6, %v89_v39 }
  0x91   :  { %1165 = vmatmul.msk.f32.vlgmr.msra.gmra.mxu2 %vm169_vm6, %v89_v39  ;;  %1167 = vmatmul.msk.f32.vlgmr.msra.gmra.mxu3 %vm169_vm6, %v89_v39 }
  0x92   :  { %1176 = vmatpush.msk.msra.mxu0 %vm173_vm1, %v161_v40  ;;  %1178 = vmatpush.msk.msra.mxu1 %vm173_vm1, %v162_v41  ;;  %v527_v40 = vld [vmem:[%s2128_s4 + $0x8] sm:$0xff] }
  0x93   :  { %1180 = vmatpush.msk.msra.mxu2 %vm173_vm1, %v163_v42  ;;  %1182 = vmatpush.msk.msra.mxu3 %vm173_vm1, %v164_v43  ;;  %v543_v41 = vld [vmem:[%s2128_s4 + $0x88] sm:$0xff] }
  0x94   :  { %v559_v42 = vld [vmem:[%s2128_s4 + $0x108] sm:$0xff] }
  0x95   :  { %v575_v43 = vld [vmem:[%s2128_s4 + $0x188] sm:$0xff] }
  0x98   :  { %1169 = vmatmul.msk.f32.vlgmr.msrb.gmra.mxu0 %vm169_vm6, %v89_v39  ;;  %1171 = vmatmul.msk.f32.vlgmr.msrb.gmra.mxu1 %vm169_vm6, %v89_v39 }
  0x99   :  { %1173 = vmatmul.msk.f32.vlgmr.msrb.gmra.mxu2 %vm169_vm6, %v89_v39  ;;  %1175 = vmatmul.msk.f32.vlgmr.msrb.gmra.mxu3 %vm169_vm6, %v89_v39 }
  0x9a   :  { %1184 = vmatpush.msk.msrb.mxu0 %vm173_vm1, %v165_v44  ;;  %1186 = vmatpush.msk.msrb.mxu1 %vm173_vm1, %v166_v45  ;;  %v526_v44 = vld [vmem:[%s2128_s4] sm:$0xff] }
  0x9b   :  { %1188 = vmatpush.msk.msrb.mxu2 %vm173_vm1, %v167_v46  ;;  %1190 = vmatpush.msk.msrb.mxu3 %vm173_vm1, %v168_v47  ;;  %v542_v45 = vld [vmem:[%s2128_s4 + $0x80] sm:$0xff]  ;;  %v605_v46 = vld [vmem:[%s2128_s4 + $0x278] sm:$0xff] }
  0x9c   :  { %v621_v47 = vld [vmem:[%s2128_s4 + $0x2f8] sm:$0xff] }
  0xa0   :  { %1177 = vmatmul.msk.f32.vlgmr.msra.gmra.mxu0 %vm169_vm6, %v89_v39  ;;  %1179 = vmatmul.msk.f32.vlgmr.msra.gmra.mxu1 %vm169_vm6, %v89_v39 }
  0xa1   :  { %1181 = vmatmul.msk.f32.vlgmr.msra.gmra.mxu2 %vm169_vm6, %v89_v39  ;;  %1183 = vmatmul.msk.f32.vlgmr.msra.gmra.mxu3 %vm169_vm6, %v89_v39 }
  0xa2   :  { %786 = vmatpush.msra.mxu0 %v541_v48  ;;  %806 = vmatpush.msra.mxu1 %v557_v49  ;;  %v558_v48 = vld [vmem:[%s2128_s4 + $0x100] sm:$0xff] }
  0xa3   :  { %826 = vmatpush.msra.mxu2 %v573_v50  ;;  %846 = vmatpush.msra.mxu3 %v589_v51  ;;  %v574_v49 = vld [vmem:[%s2128_s4 + $0x180] sm:$0xff]  ;;  %v604_v50 = vld [vmem:[%s2128_s4 + $0x270] sm:$0xff] }
  0xa4   :  { %787 = vmatpush.msra.mxu0 %v540_v52  ;;  %807 = vmatpush.msra.mxu1 %v556_v53  ;;  %v620_v51 = vld [vmem:[%s2128_s4 + $0x2f0] sm:$0xff]  ;;  %v637_v52 = vld [vmem:[%s2128_s4 + $0x378] sm:$0xff] }
  0xa5   :  { %827 = vmatpush.msra.mxu2 %v572_v54  ;;  %847 = vmatpush.msra.mxu3 %v588_v55  ;;  %v653_v53 = vld [vmem:[%s2128_s4 + $0x3f8] sm:$0xff]  ;;  %v603_v54 = vld [vmem:[%s2128_s4 + $0x268] sm:$0xff] }
  0xa6   :  { %788 = vmatpush.msra.mxu0 %v539_v56  ;;  %808 = vmatpush.msra.mxu1 %v555_v57  ;;  %v619_v55 = vld [vmem:[%s2128_s4 + $0x2e8] sm:$0xff]  ;;  %v636_v56 = vld [vmem:[%s2128_s4 + $0x370] sm:$0xff] }
  0xa7   :  { %828 = vmatpush.msra.mxu2 %v571_v58  ;;  %848 = vmatpush.msra.mxu3 %v587_v59  ;;  %v652_v57 = vld [vmem:[%s2128_s4 + $0x3f0] sm:$0xff]  ;;  %v602_v58 = vld [vmem:[%s2128_s4 + $0x260] sm:$0xff] }
  0xa8   :  { %1185 = vmatmul.msk.f32.vlgmr.msrb.gmra.mxu0 %vm169_vm6, %v89_v39  ;;  %1187 = vmatmul.msk.f32.vlgmr.msrb.gmra.mxu1 %vm169_vm6, %v89_v39  ;;  %v618_v59 = vld [vmem:[%s2128_s4 + $0x2e0] sm:$0xff] }
  0xa9   :  { %1189 = vmatmul.msk.f32.vlgmr.msrb.gmra.mxu2 %vm169_vm6, %v89_v39  ;;  %1191 = vmatmul.msk.f32.vlgmr.msrb.gmra.mxu3 %vm169_vm6, %v89_v39  ;;  %v576_v39 = vld [vmem:[%s2128_s4 + $0x190] sm:$0xff] }
  0xaa   :  { %789 = vmatpush.msra.mxu0 %v538_v60  ;;  %809 = vmatpush.msra.mxu1 %v554_v61  ;;  %v635_v60 = vld [vmem:[%s2128_s4 + $0x368] sm:$0xff] }
  0xab   :  { %829 = vmatpush.msra.mxu2 %v570_v62  ;;  %849 = vmatpush.msra.mxu3 %v586_v63  ;;  %v651_v61 = vld [vmem:[%s2128_s4 + $0x3e8] sm:$0xff]  ;;  %v601_v62 = vld [vmem:[%s2128_s4 + $0x258] sm:$0xff] }
  0xac   :  { %790 = vmatpush.msra.mxu0 %v537_v0  ;;  %810 = vmatpush.msra.mxu1 %v553_v1  ;;  %v617_v63 = vld [vmem:[%s2128_s4 + $0x2d8] sm:$0xff]  ;;  %v634_v0 = vld [vmem:[%s2128_s4 + $0x360] sm:$0xff] }
  0xad   :  { %830 = vmatpush.msra.mxu2 %v569_v2  ;;  %850 = vmatpush.msra.mxu3 %v585_v3  ;;  %v650_v1 = vld [vmem:[%s2128_s4 + $0x3e0] sm:$0xff]  ;;  %v600_v2 = vld [vmem:[%s2128_s4 + $0x250] sm:$0xff] }
  0xae   :  { %791 = vmatpush.msra.mxu0 %v536_v4  ;;  %811 = vmatpush.msra.mxu1 %v552_v5  ;;  %v616_v3 = vld [vmem:[%s2128_s4 + $0x2d0] sm:$0xff]  ;;  %v633_v4 = vld [vmem:[%s2128_s4 + $0x358] sm:$0xff] }
  0xaf   :  { %831 = vmatpush.msra.mxu2 %v568_v6  ;;  %851 = vmatpush.msra.mxu3 %v584_v7  ;;  %v649_v5 = vld [vmem:[%s2128_s4 + $0x3d8] sm:$0xff]  ;;  %v599_v6 = vld [vmem:[%s2128_s4 + $0x248] sm:$0xff] }
  0xb0   :  { %792 = vmatpush.msra.mxu0 %v535_v8  ;;  %812 = vmatpush.msra.mxu1 %v551_v9  ;;  %v615_v7 = vld [vmem:[%s2128_s4 + $0x2c8] sm:$0xff]  ;;  %v632_v8 = vld [vmem:[%s2128_s4 + $0x350] sm:$0xff] }
  0xb1   :  { %832 = vmatpush.msra.mxu2 %v567_v10  ;;  %852 = vmatpush.msra.mxu3 %v583_v11  ;;  %v648_v9 = vld [vmem:[%s2128_s4 + $0x3d0] sm:$0xff]  ;;  %v598_v10 = vld [vmem:[%s2128_s4 + $0x240] sm:$0xff] }
  0xb2   :  { %793 = vmatpush.msra.mxu0 %v534_v12  ;;  %813 = vmatpush.msra.mxu1 %v550_v13  ;;  %v614_v11 = vld [vmem:[%s2128_s4 + $0x2c0] sm:$0xff]  ;;  %v631_v12 = vld [vmem:[%s2128_s4 + $0x348] sm:$0xff] }
  0xb3   :  { %833 = vmatpush.msra.mxu2 %v566_v14  ;;  %853 = vmatpush.msra.mxu3 %v582_v15  ;;  %v647_v13 = vld [vmem:[%s2128_s4 + $0x3c8] sm:$0xff]  ;;  %v597_v14 = vld [vmem:[%s2128_s4 + $0x238] sm:$0xff] }
  0xb4   :  { %794 = vmatpush.msra.mxu0 %v533_v16  ;;  %814 = vmatpush.msra.mxu1 %v549_v17  ;;  %v613_v15 = vld [vmem:[%s2128_s4 + $0x2b8] sm:$0xff]  ;;  %v630_v16 = vld [vmem:[%s2128_s4 + $0x340] sm:$0xff] }
  0xb5   :  { %834 = vmatpush.msra.mxu2 %v565_v18  ;;  %854 = vmatpush.msra.mxu3 %v581_v19  ;;  %v646_v17 = vld [vmem:[%s2128_s4 + $0x3c0] sm:$0xff]  ;;  %v596_v18 = vld [vmem:[%s2128_s4 + $0x230] sm:$0xff] }
  0xb6   :  { %795 = vmatpush.msra.mxu0 %v532_v20  ;;  %815 = vmatpush.msra.mxu1 %v548_v21  ;;  %v612_v19 = vld [vmem:[%s2128_s4 + $0x2b0] sm:$0xff]  ;;  %v629_v20 = vld [vmem:[%s2128_s4 + $0x338] sm:$0xff] }
  0xb7   :  { %835 = vmatpush.msra.mxu2 %v564_v22  ;;  %855 = vmatpush.msra.mxu3 %v580_v23  ;;  %v645_v21 = vld [vmem:[%s2128_s4 + $0x3b8] sm:$0xff]  ;;  %v595_v22 = vld [vmem:[%s2128_s4 + $0x228] sm:$0xff] }
  0xb8   :  { %796 = vmatpush.msra.mxu0 %v531_v24  ;;  %816 = vmatpush.msra.mxu1 %v547_v25  ;;  %v611_v23 = vld [vmem:[%s2128_s4 + $0x2a8] sm:$0xff]  ;;  %v628_v24 = vld [vmem:[%s2128_s4 + $0x330] sm:$0xff] }
  0xb9   :  { %836 = vmatpush.msra.mxu2 %v563_v26  ;;  %856 = vmatpush.msra.mxu3 %v579_v27  ;;  %v644_v25 = vld [vmem:[%s2128_s4 + $0x3b0] sm:$0xff]  ;;  %v594_v26 = vld [vmem:[%s2128_s4 + $0x220] sm:$0xff] }
  0xba   :  { %797 = vmatpush.msra.mxu0 %v530_v28  ;;  %817 = vmatpush.msra.mxu1 %v546_v29  ;;  %v610_v27 = vld [vmem:[%s2128_s4 + $0x2a0] sm:$0xff]  ;;  %v627_v28 = vld [vmem:[%s2128_s4 + $0x328] sm:$0xff] }
  0xbb   :  { %837 = vmatpush.msra.mxu2 %v562_v30  ;;  %857 = vmatpush.msra.mxu3 %v578_v31  ;;  %v643_v29 = vld [vmem:[%s2128_s4 + $0x3a8] sm:$0xff]  ;;  %v593_v30 = vld [vmem:[%s2128_s4 + $0x218] sm:$0xff] }
  0xbc   :  { %798 = vmatpush.msra.mxu0 %v529_v32  ;;  %818 = vmatpush.msra.mxu1 %v545_v33  ;;  %v609_v31 = vld [vmem:[%s2128_s4 + $0x298] sm:$0xff]  ;;  %v592_v32 = vld [vmem:[%s2128_s4 + $0x210] sm:$0xff] }
  0xbd   :  { %838 = vmatpush.msra.mxu2 %v561_v34  ;;  %858 = vmatpush.msra.mxu3 %v577_v35  ;;  %v608_v33 = vld [vmem:[%s2128_s4 + $0x290] sm:$0xff]  ;;  %v591_v34 = vld [vmem:[%s2128_s4 + $0x208] sm:$0xff] }
  0xbe   :  { %799 = vmatpush.msra.mxu0 %v528_v36  ;;  %819 = vmatpush.msra.mxu1 %v544_v37  ;;  %v607_v35 = vld [vmem:[%s2128_s4 + $0x288] sm:$0xff]  ;;  %v626_v36 = vld [vmem:[%s2128_s4 + $0x320] sm:$0xff] }
  0xbf   :  { %839 = vmatpush.msra.mxu2 %v560_v38  ;;  %859 = vmatpush.msra.mxu3 %v576_v39  ;;  %v642_v37 = vld [vmem:[%s2128_s4 + $0x3a0] sm:$0xff] }
  0xc0   :  { %800 = vmatpush.msra.mxu0 %v527_v40  ;;  %820 = vmatpush.msra.mxu1 %v543_v41  ;;  %v590_v38 = vld [vmem:[%s2128_s4 + $0x200] sm:$0xff]  ;;  %v625_v40 = vld [vmem:[%s2128_s4 + $0x318] sm:$0xff] }
  0xc1   :  { %840 = vmatpush.msra.mxu2 %v559_v42  ;;  %860 = vmatpush.msra.mxu3 %v575_v43  ;;  %v606_v39 = vld [vmem:[%s2128_s4 + $0x280] sm:$0xff]  ;;  %v641_v41 = vld [vmem:[%s2128_s4 + $0x398] sm:$0xff]  ;;  %v624_v42 = vld [vmem:[%s2128_s4 + $0x310] sm:$0xff] }
  0xc2   :  { %801 = vmatpush.msra.mxu0 %v526_v44  ;;  %821 = vmatpush.msra.mxu1 %v542_v45  ;;  %v640_v43 = vld [vmem:[%s2128_s4 + $0x390] sm:$0xff]  ;;  %v623_v44 = vld [vmem:[%s2128_s4 + $0x308] sm:$0xff] }
  0xc3   :  { %841 = vmatpush.msra.mxu2 %v558_v48  ;;  %861 = vmatpush.msra.mxu3 %v574_v49  ;;  %v639_v45 = vld [vmem:[%s2128_s4 + $0x388] sm:$0xff]  ;;  %v1701_v48 = vld [vmem:[%s2130_s3] sm:$0xff] }
  0xc4   :  { %866 = vmatpush.msrb.mxu0 %v605_v46  ;;  %886 = vmatpush.msrb.mxu1 %v621_v47  ;;  %v622_v46 = vld [vmem:[%s2128_s4 + $0x300] sm:$0xff]  ;;  %v102_v49 = vperm.slane %v1701_v48, 0 }
  0xc5   :  { %906 = vmatpush.msrb.mxu2 %v637_v52  ;;  %926 = vmatpush.msrb.mxu3 %v653_v53  ;;  %v638_v47 = vld [vmem:[%s2128_s4 + $0x380] sm:$0xff] }
  0xc6   :  { %867 = vmatpush.msrb.mxu0 %v604_v50  ;;  %887 = vmatpush.msrb.mxu1 %v620_v51  ;;  %v103_v50 = vperm.slane %v1701_v48, 1 }
  0xc7   :  { %907 = vmatpush.msrb.mxu2 %v636_v56  ;;  %927 = vmatpush.msrb.mxu3 %v652_v57  ;;  %v685_v56 = vld [vmem:[%s2128_s4 + $0x4f8] sm:$0xff]  ;;  %v668_v57 = vld [vmem:[%s2128_s4 + $0x470] sm:$0xff] }
  0xc8   :  { %868 = vmatpush.msrb.mxu0 %v603_v54  ;;  %888 = vmatpush.msrb.mxu1 %v619_v55  ;;  %v669_v55 = vld [vmem:[%s2128_s4 + $0x478] sm:$0xff] }
  0xc9   :  { %908 = vmatpush.msrb.mxu2 %v635_v60  ;;  %928 = vmatpush.msrb.mxu3 %v651_v61  ;;  %v105_v60 = vperm.slane %v1701_v48, 3  ;;  %v667_v61 = vld [vmem:[%s2128_s4 + $0x468] sm:$0xff] }
  0xca   :  { %869 = vmatpush.msrb.mxu0 %v602_v58  ;;  %889 = vmatpush.msrb.mxu1 %v618_v59  ;;  %v684_v58 = vld [vmem:[%s2128_s4 + $0x4f0] sm:$0xff]  ;;  %v104_v59 = vperm.slane %v1701_v48, 2 }
  0xcb   :  { %909 = vmatpush.msrb.mxu2 %v634_v0  ;;  %929 = vmatpush.msrb.mxu3 %v650_v1  ;;  %v107_v0 = vperm.slane %v1701_v48, 5 }
  0xcc   :  { %870 = vmatpush.msrb.mxu0 %v601_v62  ;;  %890 = vmatpush.msrb.mxu1 %v617_v63  ;;  %v683_v62 = vld [vmem:[%s2128_s4 + $0x4e8] sm:$0xff]  ;;  %v106_v63 = vperm.slane %v1701_v48, 4 }
  0xcd   :  { %910 = vmatpush.msrb.mxu2 %v633_v4  ;;  %930 = vmatpush.msrb.mxu3 %v649_v5 }
  0xce   :  { %871 = vmatpush.msrb.mxu0 %v600_v2  ;;  %891 = vmatpush.msrb.mxu1 %v616_v3 }
  0xcf   :  { %911 = vmatpush.msrb.mxu2 %v632_v8  ;;  %931 = vmatpush.msrb.mxu3 %v648_v9  ;;  %v682_v8 = vld [vmem:[%s2128_s4 + $0x4e0] sm:$0xff] }
  0xd0   :  { %872 = vmatpush.msrb.mxu0 %v599_v6  ;;  %892 = vmatpush.msrb.mxu1 %v615_v7  ;;  %v666_v7 = vld [vmem:[%s2128_s4 + $0x460] sm:$0xff] }
  0xd1   :  { %912 = vmatpush.msrb.mxu2 %v631_v12  ;;  %932 = vmatpush.msrb.mxu3 %v647_v13  ;;  %v717_v12 = vld [vmem:[%s2128_s4 + $0x5f8] sm:$0xff] }
  0xd2   :  { %873 = vmatpush.msrb.mxu0 %v598_v10  ;;  %893 = vmatpush.msrb.mxu1 %v614_v11  ;;  %v701_v11 = vld [vmem:[%s2128_s4 + $0x578] sm:$0xff] }
  0xd3   :  { %913 = vmatpush.msrb.mxu2 %v630_v16  ;;  %933 = vmatpush.msrb.mxu3 %v646_v17  ;;  %v665_v13 = vld [vmem:[%s2128_s4 + $0x458] sm:$0xff]  ;;  %v716_v16 = vld [vmem:[%s2128_s4 + $0x5f0] sm:$0xff]  ;;  %v108_v17 = vperm.slane %v1701_v48, 6 }
  0xd4   :  { %874 = vmatpush.msrb.mxu0 %v597_v14  ;;  %894 = vmatpush.msrb.mxu1 %v613_v15  ;;  %v681_v14 = vld [vmem:[%s2128_s4 + $0x4d8] sm:$0xff]  ;;  %v700_v15 = vld [vmem:[%s2128_s4 + $0x570] sm:$0xff] }
  0xd5   :  { %914 = vmatpush.msrb.mxu2 %v629_v20  ;;  %934 = vmatpush.msrb.mxu3 %v645_v21  ;;  %v680_v20 = vld [vmem:[%s2128_s4 + $0x4d0] sm:$0xff]  ;;  %v699_v21 = vld [vmem:[%s2128_s4 + $0x568] sm:$0xff] }
  0xd6   :  { %875 = vmatpush.msrb.mxu0 %v596_v18  ;;  %895 = vmatpush.msrb.mxu1 %v612_v19  ;;  %v109_v18 = vperm.slane %v1701_v48, 7  ;;  %v664_v19 = vld [vmem:[%s2128_s4 + $0x450] sm:$0xff]  ;;  %v674_v48 = vld [vmem:[%s2128_s4 + $0x4a0] sm:$0xff] }
  0xd7   :  { %915 = vmatpush.msrb.mxu2 %v628_v24  ;;  %935 = vmatpush.msrb.mxu3 %v644_v25  ;;  %v663_v25 = vld [vmem:[%s2128_s4 + $0x448] sm:$0xff] }
  0xd8   :  { %876 = vmatpush.msrb.mxu0 %v595_v22  ;;  %896 = vmatpush.msrb.mxu1 %v611_v23  ;;  %v715_v22 = vld [vmem:[%s2128_s4 + $0x5e8] sm:$0xff] }
  0xd9   :  { %916 = vmatpush.msrb.mxu2 %v627_v28  ;;  %936 = vmatpush.msrb.mxu3 %v643_v29  ;;  %v698_v29 = vld [vmem:[%s2128_s4 + $0x560] sm:$0xff] }
  0xda   :  { %877 = vmatpush.msrb.mxu0 %v594_v26  ;;  %897 = vmatpush.msrb.mxu1 %v610_v27  ;;  %v679_v26 = vld [vmem:[%s2128_s4 + $0x4c8] sm:$0xff] }
  0xdb   :  { %917 = vmatpush.msrb.mxu2 %v626_v36  ;;  %937 = vmatpush.msrb.mxu3 %v642_v37  ;;  %v677_v36 = vld [vmem:[%s2128_s4 + $0x4b8] sm:$0xff]  ;;  %v696_v37 = vld [vmem:[%s2128_s4 + $0x550] sm:$0xff] }
  0xdc   :  { %878 = vmatpush.msrb.mxu0 %v593_v30  ;;  %898 = vmatpush.msrb.mxu1 %v609_v31  ;;  %v714_v30 = vld [vmem:[%s2128_s4 + $0x5e0] sm:$0xff] }
  0xdd   :  { %918 = vmatpush.msrb.mxu2 %v625_v40  ;;  %938 = vmatpush.msrb.mxu3 %v641_v41  ;;  %v662_v31 = vld [vmem:[%s2128_s4 + $0x440] sm:$0xff]  ;;  %v676_v40 = vld [vmem:[%s2128_s4 + $0x4b0] sm:$0xff]  ;;  %v695_v41 = vld [vmem:[%s2128_s4 + $0x548] sm:$0xff] }
  0xde   :  { %879 = vmatpush.msrb.mxu0 %v592_v32  ;;  %899 = vmatpush.msrb.mxu1 %v608_v33  ;;  %v678_v32 = vld [vmem:[%s2128_s4 + $0x4c0] sm:$0xff]  ;;  %v697_v33 = vld [vmem:[%s2128_s4 + $0x558] sm:$0xff] }
  0xdf   :  { %919 = vmatpush.msrb.mxu2 %v624_v42  ;;  %939 = vmatpush.msrb.mxu3 %v640_v43  ;;  %v711_v42 = vld [vmem:[%s2128_s4 + $0x5c8] sm:$0xff] }
  0xe0   :  { %880 = vmatpush.msrb.mxu0 %v591_v34  ;;  %900 = vmatpush.msrb.mxu1 %v607_v35  ;;  %v713_v34 = vld [vmem:[%s2128_s4 + $0x5d8] sm:$0xff]  ;;  %v659_v43 = vld [vmem:[%s2128_s4 + $0x428] sm:$0xff] }
  0xe1   :  { %920 = vmatpush.msrb.mxu2 %v623_v44  ;;  %940 = vmatpush.msrb.mxu3 %v639_v45  ;;  %v661_v35 = vld [vmem:[%s2128_s4 + $0x438] sm:$0xff]  ;;  %v675_v44 = vld [vmem:[%s2128_s4 + $0x4a8] sm:$0xff]  ;;  %v694_v45 = vld [vmem:[%s2128_s4 + $0x540] sm:$0xff] }
  0xe2   :  { %881 = vmatpush.msrb.mxu0 %v590_v38  ;;  %901 = vmatpush.msrb.mxu1 %v606_v39  ;;  %v712_v38 = vld [vmem:[%s2128_s4 + $0x5d0] sm:$0xff] }
  0xe3   :  { %921 = vmatpush.msrb.mxu2 %v622_v46  ;;  %941 = vmatpush.msrb.mxu3 %v638_v47  ;;  %v660_v39 = vld [vmem:[%s2128_s4 + $0x430] sm:$0xff]  ;;  %v710_v46 = vld [vmem:[%s2128_s4 + $0x5c0] sm:$0xff] }
  0xe4   :  { %v658_v47 = vld [vmem:[%s2128_s4 + $0x420] sm:$0xff] }
 0x10d   :  { %v223_v51 = vpop.f32.mrf.mxu0  ;;  %v243_v52 = vpop.f32.mrf.mxu1 }
 0x10e   :  { %v224_v53 = vadd.f32 %v223_v51, %v102_v49  ;;  %v244_v54 = vadd.f32 %v243_v52, %v103_v50  ;;  %v693_v49 = vld [vmem:[%s2128_s4 + $0x538] sm:$0xff] }
 0x10f   :  { %v709_v50 = vld [vmem:[%s2128_s4 + $0x5b8] sm:$0xff] }
 0x110   :  { %802 = vmatmul.f32.vlgmr.msra.gmra.mxu0 %v224_v53  ;;  %822 = vmatmul.f32.vlgmr.msra.gmra.mxu1 %v244_v54  ;;  %v657_v51 = vld [vmem:[%s2128_s4 + $0x418] sm:$0xff]  ;;  %v692_v53 = vld [vmem:[%s2128_s4 + $0x530] sm:$0xff] }
 0x111   :  { %946 = vmatpush.msra.mxu0 %v669_v55  ;;  %966 = vmatpush.msra.mxu1 %v685_v56  ;;  %v673_v52 = vld [vmem:[%s2128_s4 + $0x498] sm:$0xff]  ;;  %v708_v54 = vld [vmem:[%s2128_s4 + $0x5b0] sm:$0xff]  ;;  %v1852_v55 = vld [vmem:[%s2130_s3 + $0x8] sm:$0xff] }
 0x112   :  { %v656_v56 = vld [vmem:[%s2128_s4 + $0x410] sm:$0xff] }
 0x113   :  { %947 = vmatpush.msra.mxu0 %v668_v57  ;;  %967 = vmatpush.msra.mxu1 %v684_v58  ;;  %v672_v57 = vld [vmem:[%s2128_s4 + $0x490] sm:$0xff]  ;;  %v691_v58 = vld [vmem:[%s2128_s4 + $0x528] sm:$0xff] }
 0x114   :  { %v263_v1 = vpop.f32.mrf.mxu2  ;;  %v283_v2 = vpop.f32.mrf.mxu3 }
 0x115   :  { %v264_v3 = vadd.f32 %v263_v1, %v104_v59  ;;  %v284_v4 = vadd.f32 %v283_v2, %v105_v60  ;;  %948 = vmatpush.msra.mxu0 %v667_v61  ;;  %968 = vmatpush.msra.mxu1 %v683_v62  ;;  %v303_v5 = vpop.f32.mrf.mxu0  ;;  %v323_v6 = vpop.f32.mrf.mxu1  ;;  %v707_v59 = vld [vmem:[%s2128_s4 + $0x5a8] sm:$0xff]  ;;  %v110_v62 = vperm.slane %v1852_v55, 0  ;;  %v706_v1 = vld [vmem:[%s2128_s4 + $0x5a0] sm:$0xff] }
 0x116   :  { %v304_v9 = vadd.f32 %v303_v5, %v106_v63  ;;  %v324_v10 = vadd.f32 %v323_v6, %v107_v0  ;;  %v655_v60 = vld [vmem:[%s2128_s4 + $0x408] sm:$0xff]  ;;  %v111_v63 = vperm.slane %v1852_v55, 1  ;;  %v690_v0 = vld [vmem:[%s2128_s4 + $0x520] sm:$0xff]  ;;  %v689_v6 = vld [vmem:[%s2128_s4 + $0x518] sm:$0xff] }
 0x117   :  { %842 = vmatmul.f32.vlgmr.msra.gmra.mxu2 %v264_v3  ;;  %862 = vmatmul.f32.vlgmr.msra.gmra.mxu3 %v284_v4  ;;  %v671_v61 = vld [vmem:[%s2128_s4 + $0x488] sm:$0xff]  ;;  %v654_v4 = vld [vmem:[%s2128_s4 + $0x400] sm:$0xff] }
 0x118   :  { %949 = vmatpush.msra.mxu0 %v666_v7  ;;  %969 = vmatpush.msra.mxu1 %v682_v8  ;;  %v670_v5 = vld [vmem:[%s2128_s4 + $0x480] sm:$0xff]  ;;  %v705_v7 = vld [vmem:[%s2128_s4 + $0x598] sm:$0xff] }
 0x119   :  { %986 = vmatpush.msra.mxu2 %v701_v11  ;;  %1006 = vmatpush.msra.mxu3 %v717_v12  ;;  %v749_v11 = vld [vmem:[%s2128_s4 + $0x6f8] sm:$0xff]  ;;  %v688_v12 = vld [vmem:[%s2128_s4 + $0x510] sm:$0xff] }
 0x11a   :  { %882 = vmatmul.f32.vlgmr.msrb.gmra.mxu0 %v304_v9  ;;  %902 = vmatmul.f32.vlgmr.msrb.gmra.mxu1 %v324_v10  ;;  %v733_v10 = vld [vmem:[%s2128_s4 + $0x678] sm:$0xff] }
 0x11b   :  { %950 = vmatpush.msra.mxu0 %v665_v13  ;;  %970 = vmatpush.msra.mxu1 %v681_v14  ;;  %v704_v13 = vld [vmem:[%s2128_s4 + $0x590] sm:$0xff] }
 0x11c   :  { %987 = vmatpush.msra.mxu2 %v700_v15  ;;  %1007 = vmatpush.msra.mxu3 %v716_v16  ;;  %v343_v23 = vpop.f32.mrf.mxu2  ;;  %v363_v24 = vpop.f32.mrf.mxu3  ;;  %v732_v14 = vld [vmem:[%s2128_s4 + $0x670] sm:$0xff]  ;;  %v112_v16 = vperm.slane %v1852_v55, 2 }
 0x11d   :  { %951 = vmatpush.msra.mxu0 %v664_v19  ;;  %971 = vmatpush.msra.mxu1 %v680_v20  ;;  %v344_v27 = vadd.f32 %v343_v23, %v108_v17  ;;  %v364_v28 = vadd.f32 %v363_v24, %v109_v18  ;;  %v383_v2 = vpop.f32.mrf.mxu0  ;;  %v403_v3 = vpop.f32.mrf.mxu1  ;;  %v748_v15 = vld [vmem:[%s2128_s4 + $0x6f0] sm:$0xff]  ;;  %v113_v17 = vperm.slane %v1852_v55, 3  ;;  %v687_v18 = vld [vmem:[%s2128_s4 + $0x508] sm:$0xff]  ;;  %v686_v24 = vld [vmem:[%s2128_s4 + $0x500] sm:$0xff] }
 0x11e   :  { %988 = vmatpush.msra.mxu2 %v699_v21  ;;  %1008 = vmatpush.msra.mxu3 %v715_v22  ;;  %v384_v8 = vadd.f32 %v383_v2, %v110_v62  ;;  %v404_v9 = vadd.f32 %v403_v3, %v111_v63  ;;  %v703_v19 = vld [vmem:[%s2128_s4 + $0x588] sm:$0xff]  ;;  %v738_v62 = vld [vmem:[%s2128_s4 + $0x6a0] sm:$0xff]  ;;  %v757_v63 = vld [vmem:[%s2128_s4 + $0x738] sm:$0xff] }
 0x11f   :  { %952 = vmatpush.msra.mxu0 %v663_v25  ;;  %972 = vmatpush.msra.mxu1 %v679_v26  ;;  %v731_v22 = vld [vmem:[%s2128_s4 + $0x668] sm:$0xff]  ;;  %v702_v25 = vld [vmem:[%s2128_s4 + $0x580] sm:$0xff]  ;;  %v737_v2 = vld [vmem:[%s2128_s4 + $0x698] sm:$0xff] }
 0x120   :  { %989 = vmatpush.msra.mxu2 %v698_v29  ;;  %1009 = vmatpush.msra.mxu3 %v714_v30  ;;  %v747_v23 = vld [vmem:[%s2128_s4 + $0x6e8] sm:$0xff]  ;;  %v746_v29 = vld [vmem:[%s2128_s4 + $0x6e0] sm:$0xff]  ;;  %v765_v30 = vld [vmem:[%s2128_s4 + $0x778] sm:$0xff] }
 0x121   :  { %922 = vmatmul.f32.vlgmr.msrb.gmra.mxu2 %v344_v27  ;;  %942 = vmatmul.f32.vlgmr.msrb.gmra.mxu3 %v364_v28  ;;  %v730_v28 = vld [vmem:[%s2128_s4 + $0x660] sm:$0xff]  ;;  %v756_v3 = vld [vmem:[%s2128_s4 + $0x730] sm:$0xff] }
 0x122   :  { %953 = vmatpush.msra.mxu0 %v662_v31  ;;  %973 = vmatpush.msra.mxu1 %v678_v32  ;;  %v781_v31 = vld [vmem:[%s2128_s4 + $0x7f8] sm:$0xff] }
 0x123   :  { %990 = vmatpush.msra.mxu2 %v697_v33  ;;  %1010 = vmatpush.msra.mxu3 %v713_v34  ;;  %v729_v32 = vld [vmem:[%s2128_s4 + $0x658] sm:$0xff]  ;;  %v764_v34 = vld [vmem:[%s2128_s4 + $0x770] sm:$0xff] }
 0x124   :  { %954 = vmatpush.msra.mxu0 %v661_v35  ;;  %974 = vmatpush.msra.mxu1 %v677_v36  ;;  %v423_v20 = vpop.f32.mrf.mxu2  ;;  %v443_v21 = vpop.f32.mrf.mxu3  ;;  %v745_v33 = vld [vmem:[%s2128_s4 + $0x6d8] sm:$0xff]  ;;  %v780_v35 = vld [vmem:[%s2128_s4 + $0x7f0] sm:$0xff] }
 0x125   :  { %991 = vmatpush.msra.mxu2 %v696_v37  ;;  %1011 = vmatpush.msra.mxu3 %v712_v38  ;;  %v424_v26 = vadd.f32 %v423_v20, %v112_v16  ;;  %v444_v27 = vadd.f32 %v443_v21, %v113_v17  ;;  %v728_v36 = vld [vmem:[%s2128_s4 + $0x650] sm:$0xff]  ;;  %v763_v38 = vld [vmem:[%s2128_s4 + $0x768] sm:$0xff]  ;;  %v483_v16 = vpop.f32.mrf.mxu1  ;;  %v718_v17 = vld [vmem:[%s2128_s4 + $0x600] sm:$0xff] }
 0x126   :  { %955 = vmatpush.msra.mxu0 %v660_v39  ;;  %975 = vmatpush.msra.mxu1 %v676_v40  ;;  %v744_v37 = vld [vmem:[%s2128_s4 + $0x6d0] sm:$0xff]  ;;  %v779_v39 = vld [vmem:[%s2128_s4 + $0x7e8] sm:$0xff]  ;;  %v769_v20 = vld [vmem:[%s2128_s4 + $0x798] sm:$0xff] }
 0x127   :  { %992 = vmatpush.msra.mxu2 %v695_v41  ;;  %1012 = vmatpush.msra.mxu3 %v711_v42  ;;  %v727_v40 = vld [vmem:[%s2128_s4 + $0x648] sm:$0xff]  ;;  %v762_v42 = vld [vmem:[%s2128_s4 + $0x760] sm:$0xff] }
 0x128   :  { %956 = vmatpush.msra.mxu0 %v659_v43  ;;  %976 = vmatpush.msra.mxu1 %v675_v44  ;;  %v743_v41 = vld [vmem:[%s2128_s4 + $0x6c8] sm:$0xff]  ;;  %v778_v43 = vld [vmem:[%s2128_s4 + $0x7e0] sm:$0xff] }
 0x129   :  { %993 = vmatpush.msra.mxu2 %v694_v45  ;;  %1013 = vmatpush.msra.mxu3 %v710_v46  ;;  %v726_v44 = vld [vmem:[%s2128_s4 + $0x640] sm:$0xff]  ;;  %v761_v46 = vld [vmem:[%s2128_s4 + $0x758] sm:$0xff] }
 0x12a   :  { %957 = vmatpush.msra.mxu0 %v658_v47  ;;  %977 = vmatpush.msra.mxu1 %v674_v48  ;;  %v742_v45 = vld [vmem:[%s2128_s4 + $0x6c0] sm:$0xff]  ;;  %v777_v47 = vld [vmem:[%s2128_s4 + $0x7d8] sm:$0xff] }
 0x12b   :  { %994 = vmatpush.msra.mxu2 %v693_v49  ;;  %1014 = vmatpush.msra.mxu3 %v709_v50  ;;  %v725_v48 = vld [vmem:[%s2128_s4 + $0x638] sm:$0xff]  ;;  %v760_v50 = vld [vmem:[%s2128_s4 + $0x750] sm:$0xff] }
 0x12c   :  { %958 = vmatpush.msra.mxu0 %v657_v51  ;;  %978 = vmatpush.msra.mxu1 %v673_v52  ;;  %v741_v49 = vld [vmem:[%s2128_s4 + $0x6b8] sm:$0xff]  ;;  %v776_v51 = vld [vmem:[%s2128_s4 + $0x7d0] sm:$0xff] }
 0x12d   :  { %995 = vmatpush.msra.mxu2 %v692_v53  ;;  %1015 = vmatpush.msra.mxu3 %v708_v54  ;;  %v724_v52 = vld [vmem:[%s2128_s4 + $0x630] sm:$0xff]  ;;  %v759_v54 = vld [vmem:[%s2128_s4 + $0x748] sm:$0xff] }
 0x12e   :  { %959 = vmatpush.msra.mxu0 %v656_v56  ;;  %979 = vmatpush.msra.mxu1 %v672_v57  ;;  %v740_v53 = vld [vmem:[%s2128_s4 + $0x6b0] sm:$0xff]  ;;  %v775_v56 = vld [vmem:[%s2128_s4 + $0x7c8] sm:$0xff] }
 0x12f   :  { %996 = vmatpush.msra.mxu2 %v691_v58  ;;  %1016 = vmatpush.msra.mxu3 %v707_v59  ;;  %v723_v57 = vld [vmem:[%s2128_s4 + $0x628] sm:$0xff]  ;;  %v758_v59 = vld [vmem:[%s2128_s4 + $0x740] sm:$0xff] }
 0x130   :  { %960 = vmatpush.msra.mxu0 %v655_v60  ;;  %980 = vmatpush.msra.mxu1 %v671_v61  ;;  %v739_v58 = vld [vmem:[%s2128_s4 + $0x6a8] sm:$0xff]  ;;  %v774_v60 = vld [vmem:[%s2128_s4 + $0x7c0] sm:$0xff] }
 0x131   :  { %997 = vmatpush.msra.mxu2 %v690_v0  ;;  %1017 = vmatpush.msra.mxu3 %v706_v1  ;;  %v722_v61 = vld [vmem:[%s2128_s4 + $0x620] sm:$0xff]  ;;  %v773_v0 = vld [vmem:[%s2128_s4 + $0x7b8] sm:$0xff] }
 0x132   :  { %961 = vmatpush.msra.mxu0 %v654_v4  ;;  %981 = vmatpush.msra.mxu1 %v670_v5  ;;  %v721_v1 = vld [vmem:[%s2128_s4 + $0x618] sm:$0xff]  ;;  %v772_v4 = vld [vmem:[%s2128_s4 + $0x7b0] sm:$0xff] }
 0x133   :  { %998 = vmatpush.msra.mxu2 %v689_v6  ;;  %1018 = vmatpush.msra.mxu3 %v705_v7  ;;  %v720_v5 = vld [vmem:[%s2128_s4 + $0x610] sm:$0xff]  ;;  %v755_v7 = vld [vmem:[%s2128_s4 + $0x728] sm:$0xff] }
 0x134   :  { %962 = vmatmul.f32.vlgmr.msra.gmra.mxu0 %v384_v8  ;;  %982 = vmatmul.f32.vlgmr.msra.gmra.mxu1 %v404_v9  ;;  %v736_v6 = vld [vmem:[%s2128_s4 + $0x690] sm:$0xff]  ;;  %v771_v8 = vld [vmem:[%s2128_s4 + $0x7a8] sm:$0xff] }
 0x135   :  { %1026 = vmatpush.msrb.mxu0 %v733_v10  ;;  %1046 = vmatpush.msrb.mxu1 %v749_v11  ;;  %v719_v9 = vld [vmem:[%s2128_s4 + $0x608] sm:$0xff]  ;;  %v114_v11 = vperm.slane %v1852_v55, 4 }
 0x136   :  { %999 = vmatpush.msra.mxu2 %v688_v12  ;;  %1019 = vmatpush.msra.mxu3 %v704_v13  ;;  %v735_v10 = vld [vmem:[%s2128_s4 + $0x688] sm:$0xff]  ;;  %v115_v12 = vperm.slane %v1852_v55, 5  ;;  %v754_v13 = vld [vmem:[%s2128_s4 + $0x720] sm:$0xff] }
 0x137   :  { %1027 = vmatpush.msrb.mxu0 %v732_v14  ;;  %1047 = vmatpush.msrb.mxu1 %v748_v15  ;;  %v770_v14 = vld [vmem:[%s2128_s4 + $0x7a0] sm:$0xff]  ;;  %v463_v15 = vpop.f32.mrf.mxu0 }
 0x138   :  { %1000 = vmatpush.msra.mxu2 %v687_v18  ;;  %1020 = vmatpush.msra.mxu3 %v703_v19  ;;  %v734_v18 = vld [vmem:[%s2128_s4 + $0x680] sm:$0xff]  ;;  %v753_v19 = vld [vmem:[%s2128_s4 + $0x718] sm:$0xff]  ;;  %v464_v21 = vadd.f32 %v463_v15, %v114_v11 }
 0x139   :  { %1028 = vmatpush.msrb.mxu0 %v731_v22  ;;  %1048 = vmatpush.msrb.mxu1 %v747_v23  ;;  %v484_v22 = vadd.f32 %v483_v16, %v115_v12  ;;  %v752_v23 = vld [vmem:[%s2128_s4 + $0x710] sm:$0xff]  ;;  %v14_v12 = vstv %s2134_s8 }
 0x13a   :  { %1001 = vmatpush.msra.mxu2 %v686_v24  ;;  %1021 = vmatpush.msra.mxu3 %v702_v25  ;;  %v768_v24 = vld [vmem:[%s2128_s4 + $0x790] sm:$0xff]  ;;  %v116_v25 = vperm.slane %v1852_v55, 6  ;;  %15 = vst [vmem:[#allocation3] sm:$0x1] %v14_v12 }
 0x13b   :  { %1002 = vmatmul.f32.vlgmr.msra.gmra.mxu2 %v424_v26  ;;  %1022 = vmatmul.f32.vlgmr.msra.gmra.mxu3 %v444_v27  ;;  %v117_v26 = vperm.slane %v1852_v55, 7  ;;  %v751_v27 = vld [vmem:[%s2128_s4 + $0x708] sm:$0xff]  ;;  %v766_v55 = vld [vmem:[%s2128_s4 + $0x780] sm:$0xff] }
 0x13c   :  { %1029 = vmatpush.msrb.mxu0 %v730_v28  ;;  %1049 = vmatpush.msrb.mxu1 %v746_v29  ;;  %v767_v28 = vld [vmem:[%s2128_s4 + $0x788] sm:$0xff]  ;;  %v503_v29 = vpop.f32.mrf.mxu2 }
 0x13d   :  { %1066 = vmatpush.msrb.mxu2 %v765_v30  ;;  %1086 = vmatpush.msrb.mxu3 %v781_v31  ;;  %v523_v30 = vpop.f32.mrf.mxu3  ;;  %v750_v31 = vld [vmem:[%s2128_s4 + $0x700] sm:$0xff] }
 0x13e   :  { %1030 = vmatpush.msrb.mxu0 %v729_v32  ;;  %1050 = vmatpush.msrb.mxu1 %v745_v33  ;;  %v504_v32 = vadd.f32 %v503_v29, %v116_v25  ;;  %v524_v33 = vadd.f32 %v523_v30, %v117_v26 }
 0x13f   :  { %1067 = vmatpush.msrb.mxu2 %v764_v34  ;;  %1087 = vmatpush.msrb.mxu3 %v780_v35  ;;  %v1194_v34 = vld [vmem:[%s2129_s5] ss:$0 sm:$0xff] }
 0x140   :  { %1031 = vmatpush.msrb.mxu0 %v728_v36  ;;  %1051 = vmatpush.msrb.mxu1 %v744_v37 }
 0x141   :  { %1068 = vmatpush.msrb.mxu2 %v763_v38  ;;  %1088 = vmatpush.msrb.mxu3 %v779_v39 }
 0x142   :  { %1032 = vmatpush.msrb.mxu0 %v727_v40  ;;  %1052 = vmatpush.msrb.mxu1 %v743_v41 }
 0x143   :  { %1069 = vmatpush.msrb.mxu2 %v762_v42  ;;  %1089 = vmatpush.msrb.mxu3 %v778_v43 }
 0x144   :  { %1033 = vmatpush.msrb.mxu0 %v726_v44  ;;  %1053 = vmatpush.msrb.mxu1 %v742_v45 }
 0x145   :  { %1070 = vmatpush.msrb.mxu2 %v761_v46  ;;  %1090 = vmatpush.msrb.mxu3 %v777_v47 }
 0x146   :  { %1034 = vmatpush.msrb.mxu0 %v725_v48  ;;  %1054 = vmatpush.msrb.mxu1 %v741_v49 }
 0x147   :  { %1071 = vmatpush.msrb.mxu2 %v760_v50  ;;  %1091 = vmatpush.msrb.mxu3 %v776_v51 }
 0x148   :  { %1035 = vmatpush.msrb.mxu0 %v724_v52  ;;  %1055 = vmatpush.msrb.mxu1 %v740_v53 }
 0x149   :  { %1072 = vmatpush.msrb.mxu2 %v759_v54  ;;  %1092 = vmatpush.msrb.mxu3 %v775_v56 }
 0x14a   :  { %1036 = vmatpush.msrb.mxu0 %v723_v57  ;;  %1056 = vmatpush.msrb.mxu1 %v739_v58 }
 0x14b   :  { %1073 = vmatpush.msrb.mxu2 %v758_v59  ;;  %1093 = vmatpush.msrb.mxu3 %v774_v60 }
 0x14c   :  { %1037 = vmatpush.msrb.mxu0 %v722_v61  ;;  %1057 = vmatpush.msrb.mxu1 %v738_v62 }
 0x14d   :  { %1074 = vmatpush.msrb.mxu2 %v757_v63  ;;  %1094 = vmatpush.msrb.mxu3 %v773_v0 }
 0x14e   :  { %1038 = vmatpush.msrb.mxu0 %v721_v1  ;;  %1058 = vmatpush.msrb.mxu1 %v737_v2 }
 0x14f   :  { %1075 = vmatpush.msrb.mxu2 %v756_v3  ;;  %1095 = vmatpush.msrb.mxu3 %v772_v4  ;;  %v1195_v4 = vld [vmem:[%s2131_s6] ss:$0 sm:$0xff] }
 0x150   :  { %1039 = vmatpush.msrb.mxu0 %v720_v5  ;;  %1059 = vmatpush.msrb.mxu1 %v736_v6 }
 0x151   :  { %1076 = vmatpush.msrb.mxu2 %v755_v7  ;;  %1096 = vmatpush.msrb.mxu3 %v771_v8  ;;  %v1196_v7 = vld [vmem:[%s2132_s7] ss:$0 sm:$0xff] }
 0x152   :  { %1040 = vmatpush.msrb.mxu0 %v719_v9  ;;  %1060 = vmatpush.msrb.mxu1 %v735_v10  ;;  %v1109_v8 = vld [vmem:[%s2133_s1] sm:$0x3] }
 0x153   :  { %1077 = vmatpush.msrb.mxu2 %v754_v13  ;;  %1097 = vmatpush.msrb.mxu3 %v770_v14  ;;  %v1123_v10 = vmul.f32 %v1196_v7, %v1109_v8  ;;  %v1197_v14 = vld [vmem:[#allocation3] ss:$0 sm:$0xff] }
 0x154   :  { %1041 = vmatpush.msrb.mxu0 %v718_v17  ;;  %1061 = vmatpush.msrb.mxu1 %v734_v18 }
 0x155   :  { %1078 = vmatpush.msrb.mxu2 %v753_v19  ;;  %1098 = vmatpush.msrb.mxu3 %v769_v20  ;;  %v1125_v11 = vsel %vm1124_vm8, %v1123_v10, 0.0 }
 0x156   :  { %1042 = vmatmul.f32.vlgmr.msrb.gmra.mxu0 %v464_v21  ;;  %1062 = vmatmul.f32.vlgmr.msrb.gmra.mxu1 %v484_v22 }
 0x157   :  { %1079 = vmatpush.msrb.mxu2 %v752_v23  ;;  %1099 = vmatpush.msrb.mxu3 %v768_v24 }
 0x159   :  { %1080 = vmatpush.msrb.mxu2 %v751_v27  ;;  %1100 = vmatpush.msrb.mxu3 %v767_v28 }
 0x15b   :  { %1081 = vmatpush.msrb.mxu2 %v750_v31  ;;  %1101 = vmatpush.msrb.mxu3 %v766_v55 }
 0x15c   :  { %1082 = vmatmul.f32.vlgmr.msrb.gmra.mxu2 %v504_v32  ;;  %1102 = vmatmul.f32.vlgmr.msrb.gmra.mxu3 %v524_v33 }
 0x18d   :  { %v803_v35 = vpop.f32.mrf.mxu0  ;;  %v823_v37 = vpop.f32.mrf.mxu1 }
 0x18e   :  { %v804_v36 = vadd.f32 %v1194_v34, %v803_v35 }
 0x190   :  { %v824_v39 = vadd.f32 %v823_v37, %v804_v36 }
 0x197   :  { %v883_v43 = vpop.f32.mrf.mxu0  ;;  %v903_v45 = vpop.f32.mrf.mxu1 }
 0x19a   :  { %v843_v38 = vpop.f32.mrf.mxu2  ;;  %v863_v41 = vpop.f32.mrf.mxu3 }
 0x19b   :  { %v844_v40 = vadd.f32 %v843_v38, %v824_v39 }
 0x19d   :  { %v864_v42 = vadd.f32 %v863_v41, %v844_v40 }
 0x19f   :  { %v884_v44 = vadd.f32 %v883_v43, %v864_v42 }
 0x1a1   :  { %v904_v46 = vadd.f32 %v903_v45, %v884_v44 }
 0x1a4   :  { %v923_v47 = vpop.f32.mrf.mxu2  ;;  %v943_v49 = vpop.f32.mrf.mxu3 }
 0x1a5   :  { %v924_v48 = vadd.f32 %v923_v47, %v904_v46 }
 0x1a7   :  { %v944_v51 = vadd.f32 %v943_v49, %v924_v48 }
 0x1b1   :  { %v963_v50 = vpop.f32.mrf.mxu0  ;;  %v983_v53 = vpop.f32.mrf.mxu1 }
 0x1b2   :  { %v964_v52 = vadd.f32 %v963_v50, %v944_v51 }
 0x1b4   :  { %v984_v56 = vadd.f32 %v983_v53, %v964_v52 }
 0x1be   :  { %v1003_v54 = vpop.f32.mrf.mxu2  ;;  %v1023_v58 = vpop.f32.mrf.mxu3 }
 0x1bf   :  { %v1004_v57 = vadd.f32 %v1003_v54, %v984_v56 }
 0x1c1   :  { %v1024_v60 = vadd.f32 %v1023_v58, %v1004_v57 }
 0x1d3   :  { %v1043_v59 = vpop.f32.mrf.mxu0  ;;  %v1063_v62 = vpop.f32.mrf.mxu1 }
 0x1d4   :  { %v1044_v61 = vadd.f32 %v1043_v59, %v1024_v60 }
 0x1d6   :  { %v1064_v63 = vadd.f32 %v1063_v62, %v1044_v61 }
 0x1df   :  { %v1083_v0 = vpop.f32.mrf.mxu2  ;;  %v1103_v2 = vpop.f32.mrf.mxu3 }
 0x1e0   :  { %v1084_v1 = vadd.f32 %v1083_v0, %v1064_v63 }
 0x1e2   :  { %v1104_v3 = vadd.f32 %v1103_v2, %v1084_v1 }
 0x1e4   :  { %v1106_v5 = vmax.f32 %v1104_v3, 0.0 }
 0x1e6   :  { %v1114_v6 = vmul.f32 %v1195_v4, %v1106_v5 }
 0x1e8   :  { %v1116_v9 = vsel %vm1115_vm7, %v1114_v6, 0.0 }
 0x1e9   :  { %1117 = vadd.xlane.f32.xlu2 %v1116_v9 }
 0x1f1   :  { %1126 = vadd.xlane.f32.xlu2 %v1125_v11 }
 0x25c   :  { %v1118_v13 = vpop.xlane.xlu2 %1117 }
 0x264   :  { %v1127_v15 = vpop.xlane.xlu2 %1126 }
 0x265   :  { %v1128_v16 = vadd.f32 %v1127_v15, %v1118_v13 }
 0x267   :  { %v1133_v17 = vadd.f32 %v1197_v14, %v1128_v16 }
 0x269   :  { %v1192_v18 = vmul.f32 -1.442695, %v1133_v17 }
 0x26b   :  { %1198 = vpow2.f32 %v1192_v18 }
 0x271   :  { %v1199_v19 = vpop.eup %1198 }
 0x272   :  { %v1137_v20 = vadd.f32 1.0, %v1199_v19 }
 0x274   :  { %1200 = vrcp.f32 %v1137_v20  ;;  %v1149_v24 = vand.u32 2147483648, %v1137_v20  ;;  %v1147_v26 = vand.u32 2147483647, %v1137_v20  ;;  %vm1143_vm10 = vweird.f32 %v1137_v20 }
 0x276   :  { %v1150_v28 = vor.u32 1.1754944e-38, %v1149_v24  ;;  %vm1148_vm12 = vcmp.eq.f32.partialorder %v1147_v26, 8.507059e+37 }
 0x27a   :  { %v1201_v21 = vpop.eup %1200 }
 0x27b   :  { %v1139_v22 = vmul.f32 %v1201_v21, %v1137_v20  ;;  %vm1144_vm9 = vweird.f32 %v1201_v21 }
 0x27c   :  { %vm1145_vm11 = vmor %vm1143_vm10, %vm1144_vm9 }
 0x27d   :  { %v1140_v23 = vsub.f32 1.0, %v1139_v22 }
 0x27f   :  { %v1141_v25 = vmul.f32 %v1201_v21, %v1140_v23 }
 0x281   :  { %v1142_v27 = vadd.f32 %v1201_v21, %v1141_v25 }
 0x283   :  { %v1146_v29 = vsel %vm1145_vm11, %v1201_v21, %v1142_v27 }
 0x284   :  { %v1151_v30 = vsel %vm1148_vm12, %v1150_v28, %v1146_v29 }
 0x285   :  { %v1153_v31 = vmul.f32 100.0, %v1151_v30 }
 0x287   :  { %1155 = vst.msk [vmem:[%s2135_s9] sm:$0x3] %vm1154_vm13, %v1153_v31 }

</bundles_post_ra>
